<compile_context>
chip_gen: v6e
topology: v6e:2x2x1
jax: 0.10.0
libtpu: 0.0.40
codegen_flags: <defaults>
</compile_context>

<pallas_src>
import functools

import jax
import jax.numpy as jnp
from jax import lax
from jax.experimental import pallas as pl
from jax.experimental.pallas import tpu as pltpu


def _rfaconv_kernel(p_ref, logit_w_ref, gen_w_ref, gmax_hi_ref, gmax_lo_ref,
                    den_w_ref, bnsh_ref, conv_w_ref, bias_ref, out_ref,
                    *, mm_dtype):
    f32 = jnp.float32
    p = p_ref[...].astype(f32)                                        # (TM, CK)

    # get_weight: avgpool over taps + 1x1 grouped expansion fused into one matmul
    logits = jnp.dot(p, logit_w_ref[...], preferred_element_type=f32)  # (TM, CK)

    # stable grouped softmax: per-(row, channel) max over the k^2 groups,
    # already replicated to all CK lanes (max(mean*gw_max_c, mean*gw_min_c)).
    gmax = jnp.maximum(
        jnp.dot(p, gmax_hi_ref[...], preferred_element_type=f32),
        jnp.dot(p, gmax_lo_ref[...], preferred_element_type=f32))
    e = jnp.exp(logits - gmax)                                         # EUP
    den = jnp.dot(e, den_w_ref[...], preferred_element_type=f32)       # per-channel sum, replicated
    att = e * pl.reciprocal(den, approx=True)                          # softmax weights (TM, CK)

    # generate_feature: depthwise kxk conv (BN scale folded) + BN shift + ReLU
    feat = jnp.maximum(
        jnp.dot(p, gen_w_ref[...], preferred_element_type=f32) + bnsh_ref[...],
        0.0)

    # attention weighting + final kxk / stride-k conv fused into one MXU matmul
    wdat = (feat * att).astype(mm_dtype)
    out = jnp.dot(wdat, conv_w_ref[...], preferred_element_type=f32) + bias_ref[...]
    out_ref[...] = out.astype(out_ref.dtype)


def rfaconv_pallas(x, params, kernel_size, stride=1, tile_m=None,
                   matmul_dtype=jnp.bfloat16):
    gw_w, gen_w, bn_gamma, bn_beta, bn_mean, bn_var, conv_w, conv_b = params
    k = kernel_size
    pad = k // 2
    B, C, H, W = x.shape
    O = conv_w.shape[0]
    KK = k * k
    CK = KK * C
    Ho = (H + 2 * pad - k) // stride + 1
    Wo = (W + 2 * pad - k) // stride + 1
    M = B * Ho * Wo

    # ---- glue: im2col patch extraction (zero-padded, strided), bf16 stream ----
    # TODO(synk): move in-kernel (halo'd NHWC slab + shifted VMEM slices) to kill
    # the k^2 x HBM amplification; until then the patch stream is bf16.
    xp = jnp.pad(x, ((0, 0), (0, 0), (pad, pad), (pad, pad)))
    cols = []
    for n1 in range(k):
        for n2 in range(k):
            cols.append(lax.slice(
                xp, (0, 0, n1, n2),
                (B, C, n1 + stride * (Ho - 1) + 1, n2 + stride * (Wo - 1) + 1),
                (1, 1, stride, stride)))
    # (KK, B, C, Ho, Wo) -> (B, Ho, Wo, KK, C) -> (M, KK*C), lane idx = tap*C + c
    patches = (jnp.stack(cols, axis=0).transpose(1, 3, 4, 0, 2)
               .reshape(M, CK).astype(jnp.bfloat16))

    # ---- fold everything except the data into small lane-major f32 matrices ----
    eyeC = jnp.eye(C, dtype=jnp.float32)
    scale = bn_gamma / jnp.sqrt(bn_var + 1e-5)                   # index = c*KK + j
    shift = bn_beta - bn_mean * scale
    gen = gen_w.reshape(C, KK, KK)                               # [c, j, tap]
    gw = gw_w.reshape(C, KK)                                     # [c, j]

    # w_gen[tap*C + c, j*C + c] = gen[c, j, tap] * bn_scale[c*KK + j]
    genS = gen * scale.reshape(C, KK, 1)
    w_gen = jnp.einsum('cjt,cd->tcjd', genS, eyeC).reshape(CK, CK).astype(jnp.float32)
    # w_logit[tap*C + c, j*C + c] = gw[c, j] / KK   (avgpool + 1x1 expansion fused)
    w_logit = jnp.broadcast_to(
        jnp.einsum('cj,cd->cjd', gw / KK, eyeC)[None],
        (KK, C, KK, C)).reshape(CK, CK).astype(jnp.float32)
    # w_hi/w_lo: replicate (max_j gw[c,j])*mean / (min_j gw[c,j])*mean to every lane
    w_hi = jnp.broadcast_to((jnp.diag(gw.max(axis=1)) / KK)[None, :, None, :],
                            (KK, C, KK, C)).reshape(CK, CK).astype(jnp.float32)
    w_lo = jnp.broadcast_to((jnp.diag(gw.min(axis=1)) / KK)[None, :, None, :],
                            (KK, C, KK, C)).reshape(CK, CK).astype(jnp.float32)
    # w_den[j*C + d, j'*C + c] = [d == c]  (softmax denominator, replicated)
    w_den = jnp.broadcast_to(eyeC[None, :, None, :],
                             (KK, C, KK, C)).reshape(CK, CK).astype(jnp.float32)
    # BN shift laid out to match the (j, c) lane order
    bnsh = shift.reshape(C, KK).T.reshape(1, CK).astype(jnp.float32)
    # final conv: W2[j*C + c, o] = conv_w[o, c, n1, n2] with j = n1*k + n2
    w2 = (conv_w.reshape(O, C, KK).transpose(2, 1, 0)
          .reshape(CK, O).astype(matmul_dtype))
    bias = conv_b.reshape(1, O).astype(jnp.float32)

    # ---- tiling: >= 4 grid steps (2 per v7x TC), up to 512 rows per tile ----
    if tile_m is None:
        tile_m = max(8, (min(512, max(8, M // 4)) // 8) * 8)
    Mp = ((M + tile_m - 1) // tile_m) * tile_m
    if Mp != M:
        patches = jnp.pad(patches, ((0, Mp - M), (0, 0)))

    # ---- VMEM budget (double-buffered tiles + weights + in-kernel f32 slabs) ----
    def _ru(v, m):
        return ((v + m - 1) // m) * m
    ck_l, o_l, ck_s = _ru(CK, 128), _ru(O, 128), _ru(CK, 8)
    stream_b = 2 * tile_m * ck_l * 2 + 2 * tile_m * o_l * 4
    weight_b = 2 * (5 * ck_s * ck_l * 4 + 8 * ck_l * 4 + ck_s * o_l * 2 + 8 * o_l * 4)
    scratch_b = 8 * tile_m * ck_l * 4
    vmem_limit = int(min(48 << 20,                       # <= 48 MiB (v7x headroom)
                         max(16 << 20, 2 * (stream_b + weight_b + scratch_b))))

    kern = functools.partial(_rfaconv_kernel, mm_dtype=matmul_dtype)
    weights = (w_logit, w_gen, w_hi, w_lo, w_den, bnsh, w2, bias)

    def _call(single_buffer_weights):
        def const_spec(shape):
            if single_buffer_weights:
                return pl.BlockSpec(shape, lambda i: (0,) * len(shape),
                                    pipeline_mode=pl.Buffered(buffer_count=1))
            return pl.BlockSpec(shape, lambda i: (0,) * len(shape))

        return pl.pallas_call(
            kern,
            out_shape=jax.ShapeDtypeStruct((Mp, O), jnp.float32),
            grid_spec=pltpu.PrefetchScalarGridSpec(
                num_scalar_prefetch=0,
                grid=(Mp // tile_m,),
                in_specs=[pl.BlockSpec((tile_m, CK), lambda i: (i, 0))]
                         + [const_spec(w.shape) for w in weights],
                out_specs=pl.BlockSpec((tile_m, O), lambda i: (i, 0)),
            ),
            compiler_params=pltpu.CompilerParams(
                dimension_semantics=("parallel",),
                vmem_limit_bytes=vmem_limit),
        )(patches, *weights)

    try:
        out_flat = _call(True)
    except Exception:
        # pl.Buffered(1) single-buffering of the grid-invariant weights is not
        # available on this jax version; default double buffering is equally
        # correct and only costs ~2x the (tiny) weight footprint.
        out_flat = _call(False)

    out = out_flat[:M, :].reshape(B, Ho, Wo, O).transpose(0, 3, 1, 2)  # NCHW
    return out.astype(x.dtype)


def rfaconv_reference(x, params, k, stride=1):
    """Pure-JAX reference matching PyTorch RFAConv.forward (eval-mode BN)."""
    gw_w, gen_w, bn_gamma, bn_beta, bn_mean, bn_var, conv_w, conv_b = params
    B, C, H, W = x.shape
    pad = k // 2
    dn = ('NCHW', 'OIHW', 'NCHW')

    # AvgPool2d(k, padding=k//2, stride, count_include_pad=True)
    avg_k = jnp.ones((C, 1, k, k), x.dtype) / float(k * k)
    avg = lax.conv_general_dilated(x, avg_k, (stride, stride),
                                   [(pad, pad), (pad, pad)],
                                   dimension_numbers=dn, feature_group_count=C)
    # 1x1 depthwise-expansion conv (groups=C)
    weight = lax.conv_general_dilated(avg, gw_w, (1, 1), [(0, 0), (0, 0)],
                                      dimension_numbers=dn,
                                      feature_group_count=C)
    Ho, Wo = weight.shape[2:]
    weighted = jax.nn.softmax(weight.reshape(B, C, k * k, Ho, Wo), axis=2)

    # generate_feature: grouped kxk conv + BN(eval) + ReLU
    feat = lax.conv_general_dilated(x, gen_w, (stride, stride),
                                    [(pad, pad), (pad, pad)],
                                    dimension_numbers=dn,
                                    feature_group_count=C)
    scale = bn_gamma / jnp.sqrt(bn_var + 1e-5)
    shift = bn_beta - bn_mean * scale
    feat = jnp.maximum(feat * scale[None, :, None, None]
                       + shift[None, :, None, None], 0.0)
    feat = feat.reshape(B, C, k * k, Ho, Wo)

    wd = feat * weighted
    # rearrange 'b c (n1 n2) h w -> b c (h n1) (w n2)'
    wd = wd.reshape(B, C, k, k, Ho, Wo).transpose(0, 1, 4, 2, 5, 3)
    wd = wd.reshape(B, C, Ho * k, Wo * k)

    out = lax.conv_general_dilated(wd, conv_w, (k, k), [(0, 0), (0, 0)],
                                   dimension_numbers=dn)
    return out + conv_b[None, :, None, None]


if __name__ == "__main__":
    B, C, H, W = 2, 4, 16, 16     # input x: NCHW
    O = 8                         # out_channel
    k = 3                         # kernel_size
    stride = 1

    key = jax.random.PRNGKey(0)
    keys = jax.random.split(key, 7)
    x = jax.random.normal(keys[0], (B, C, H, W), jnp.float32)

    # Deterministic synthetic parameters (shapes per the module's __init__).
    gw_w = 0.3 * jax.random.normal(keys[1], (C * k * k, 1, 1, 1), jnp.float32)
    gen_w = 0.2 * jax.random.normal(keys[2], (C * k * k, 1, k, k), jnp.float32)
    bn_gamma = 1.0 + 0.1 * jax.random.normal(keys[3], (C * k * k,), jnp.float32)
    bn_beta = 0.1 * jax.random.normal(keys[4], (C * k * k,), jnp.float32)
    bn_mean = jnp.zeros((C * k * k,), jnp.float32)
    bn_var = jnp.ones((C * k * k,), jnp.float32)
    conv_w = 0.1 * jax.random.normal(keys[5], (O, C, k, k), jnp.float32)
    conv_b = 0.05 * jax.random.normal(keys[6], (O,), jnp.float32)
    params = (gw_w, gen_w, bn_gamma, bn_beta, bn_mean, bn_var, conv_w, conv_b)

    out = rfaconv_pallas(x, params, k, stride)
    out = jax.block_until_ready(out)

    ref = rfaconv_reference(x, params, k, stride)
    assert out.shape == ref.shape == (B, O, H, W), (out.shape, ref.shape)
    # Tolerance covers: bf16 patch stream, bf16 final MXU matmul (f32 acc) and
    # the approximate EUP reciprocal in the softmax normalization.
    err = float(jnp.max(jnp.abs(out - ref)))
    assert err < 1e-2, f"max abs err {err}"
    print("KERNEL_OK")
</pallas_src>

<mosaic_0001>
module attributes {stable_mosaic.version = 11 : i64} {
  func.func @_rfaconv_kernel(%arg0: i32, %arg1: memref<128x36xbf16, #tpu.memory_space<vmem>>, %arg2: memref<36x36xf32, #tpu.memory_space<vmem>>, %arg3: memref<36x36xf32, #tpu.memory_space<vmem>>, %arg4: memref<36x36xf32, #tpu.memory_space<vmem>>, %arg5: memref<36x36xf32, #tpu.memory_space<vmem>>, %arg6: memref<36x36xf32, #tpu.memory_space<vmem>>, %arg7: memref<1x36xf32, #tpu.memory_space<vmem>>, %arg8: memref<36x8xbf16, #tpu.memory_space<vmem>>, %arg9: memref<1x8xf32, #tpu.memory_space<vmem>>, %arg10: memref<128x8xf32, #tpu.memory_space<vmem>>) attributes {dimension_semantics = [#tpu.dimension_semantics<parallel>], iteration_bounds = array<i64: 4>, scalar_prefetch = 0 : i64, scratch_operands = 0 : i64, tpu.core_type = #tpu.core_type<tc>, window_params = [{transform_indices = @transform_0, window_bounds = array<i64: 128, 36>}, {pipeline_mode = #tpu.pipeline_mode<synchronous>, transform_indices = @transform_1, window_bounds = array<i64: 36, 36>}, {pipeline_mode = #tpu.pipeline_mode<synchronous>, transform_indices = @transform_2, window_bounds = array<i64: 36, 36>}, {pipeline_mode = #tpu.pipeline_mode<synchronous>, transform_indices = @transform_3, window_bounds = array<i64: 36, 36>}, {pipeline_mode = #tpu.pipeline_mode<synchronous>, transform_indices = @transform_4, window_bounds = array<i64: 36, 36>}, {pipeline_mode = #tpu.pipeline_mode<synchronous>, transform_indices = @transform_5, window_bounds = array<i64: 36, 36>}, {pipeline_mode = #tpu.pipeline_mode<synchronous>, transform_indices = @transform_6, window_bounds = array<i64: 1, 36>}, {pipeline_mode = #tpu.pipeline_mode<synchronous>, transform_indices = @transform_7, window_bounds = array<i64: 36, 8>}, {pipeline_mode = #tpu.pipeline_mode<synchronous>, transform_indices = @transform_8, window_bounds = array<i64: 1, 8>}, {transform_indices = @transform_9, window_bounds = array<i64: 128, 8>}]} {
    %c0 = arith.constant 0 : index
    %c0_0 = arith.constant 0 : index
    %0 = vector.load %arg1[%c0, %c0_0] : memref<128x36xbf16, #tpu.memory_space<vmem>>, vector<128x36xbf16>
    %1 = arith.extf %0 : vector<128x36xbf16> to vector<128x36xf32>
    %c0_1 = arith.constant 0 : index
    %c0_2 = arith.constant 0 : index
    %2 = vector.load %arg2[%c0_1, %c0_2] : memref<36x36xf32, #tpu.memory_space<vmem>>, vector<36x36xf32>
    %cst = arith.constant dense<0.000000e+00> : vector<128x36xf32>
    %3 = tpu.matmul %1, %2, %cst {dimension_numbers = #tpu.dot_dimension_numbers<[1], [0], [0], [1], [0, 0, 1, 1], [], []>} : vector<128x36xf32>, vector<36x36xf32>, vector<128x36xf32> -> vector<128x36xf32>
    %c0_3 = arith.constant 0 : index
    %c0_4 = arith.constant 0 : index
    %4 = vector.load %arg4[%c0_3, %c0_4] : memref<36x36xf32, #tpu.memory_space<vmem>>, vector<36x36xf32>
    %cst_5 = arith.constant dense<0.000000e+00> : vector<128x36xf32>
    %5 = tpu.matmul %1, %4, %cst_5 {dimension_numbers = #tpu.dot_dimension_numbers<[1], [0], [0], [1], [0, 0, 1, 1], [], []>} : vector<128x36xf32>, vector<36x36xf32>, vector<128x36xf32> -> vector<128x36xf32>
    %c0_6 = arith.constant 0 : index
    %c0_7 = arith.constant 0 : index
    %6 = vector.load %arg5[%c0_6, %c0_7] : memref<36x36xf32, #tpu.memory_space<vmem>>, vector<36x36xf32>
    %cst_8 = arith.constant dense<0.000000e+00> : vector<128x36xf32>
    %7 = tpu.matmul %1, %6, %cst_8 {dimension_numbers = #tpu.dot_dimension_numbers<[1], [0], [0], [1], [0, 0, 1, 1], [], []>} : vector<128x36xf32>, vector<36x36xf32>, vector<128x36xf32> -> vector<128x36xf32>
    %8 = arith.maximumf %5, %7 : vector<128x36xf32>
    %9 = arith.subf %3, %8 : vector<128x36xf32>
    %10 = math.exp %9 : vector<128x36xf32>
    %c0_9 = arith.constant 0 : index
    %c0_10 = arith.constant 0 : index
    %11 = vector.load %arg6[%c0_9, %c0_10] : memref<36x36xf32, #tpu.memory_space<vmem>>, vector<36x36xf32>
    %cst_11 = arith.constant dense<0.000000e+00> : vector<128x36xf32>
    %12 = tpu.matmul %10, %11, %cst_11 {dimension_numbers = #tpu.dot_dimension_numbers<[1], [0], [0], [1], [0, 0, 1, 1], [], []>} : vector<128x36xf32>, vector<36x36xf32>, vector<128x36xf32> -> vector<128x36xf32>
    %13 = tpu.reciprocal %12 {approx = true} : vector<128x36xf32> -> vector<128x36xf32>
    %14 = arith.mulf %10, %13 : vector<128x36xf32>
    %c0_12 = arith.constant 0 : index
    %c0_13 = arith.constant 0 : index
    %15 = vector.load %arg3[%c0_12, %c0_13] : memref<36x36xf32, #tpu.memory_space<vmem>>, vector<36x36xf32>
    %cst_14 = arith.constant dense<0.000000e+00> : vector<128x36xf32>
    %16 = tpu.matmul %1, %15, %cst_14 {dimension_numbers = #tpu.dot_dimension_numbers<[1], [0], [0], [1], [0, 0, 1, 1], [], []>} : vector<128x36xf32>, vector<36x36xf32>, vector<128x36xf32> -> vector<128x36xf32>
    %c0_15 = arith.constant 0 : index
    %c0_16 = arith.constant 0 : index
    %17 = vector.load %arg7[%c0_15, %c0_16] : memref<1x36xf32, #tpu.memory_space<vmem>>, vector<1x36xf32>
    %18 = vector.broadcast %17 : vector<1x36xf32> to vector<128x36xf32>
    %19 = arith.addf %16, %18 : vector<128x36xf32>
    %cst_17 = arith.constant 0.000000e+00 : f32
    %20 = vector.broadcast %cst_17 : f32 to vector<128x36xf32>
    %21 = arith.maximumf %19, %20 : vector<128x36xf32>
    %22 = arith.mulf %21, %14 : vector<128x36xf32>
    %23 = arith.truncf %22 : vector<128x36xf32> to vector<128x36xbf16>
    %c0_18 = arith.constant 0 : index
    %c0_19 = arith.constant 0 : index
    %24 = vector.load %arg8[%c0_18, %c0_19] : memref<36x8xbf16, #tpu.memory_space<vmem>>, vector<36x8xbf16>
    %cst_20 = arith.constant dense<0.000000e+00> : vector<128x8xf32>
    %25 = tpu.matmul %23, %24, %cst_20 {dimension_numbers = #tpu.dot_dimension_numbers<[1], [0], [0], [1], [0, 0, 1, 1], [], []>} : vector<128x36xbf16>, vector<36x8xbf16>, vector<128x8xf32> -> vector<128x8xf32>
    %c0_21 = arith.constant 0 : index
    %c0_22 = arith.constant 0 : index
    %26 = vector.load %arg9[%c0_21, %c0_22] : memref<1x8xf32, #tpu.memory_space<vmem>>, vector<1x8xf32>
    %27 = vector.broadcast %26 : vector<1x8xf32> to vector<128x8xf32>
    %28 = arith.addf %25, %27 : vector<128x8xf32>
    %c0_23 = arith.constant 0 : index
    %c0_24 = arith.constant 0 : index
    %29 = vector.load %arg10[%c0_23, %c0_24] : memref<128x8xf32, #tpu.memory_space<vmem>>, vector<128x8xf32>
    tpu.vector_store %arg10[%c0_23, %c0_24], %28 {strides = array<i32>} : memref<128x8xf32, #tpu.memory_space<vmem>>, vector<128x8xf32>,
    return
  }
  func.func @transform_0(%arg0: i32) -> (i32, i32) {
    %c0_i32 = arith.constant 0 : i32
    %c0_i32_0 = arith.constant 0 : i32
    return %arg0, %c0_i32 : i32, i32
  }
  func.func @transform_1(%arg0: i32) -> (i32, i32) {
    %c0_i32 = arith.constant 0 : i32
    %c0_i32_0 = arith.constant 0 : i32
    %c0_i32_1 = arith.constant 0 : i32
    return %c0_i32, %c0_i32_0 : i32, i32
  }
  func.func @transform_2(%arg0: i32) -> (i32, i32) {
    %c0_i32 = arith.constant 0 : i32
    %c0_i32_0 = arith.constant 0 : i32
    %c0_i32_1 = arith.constant 0 : i32
    return %c0_i32, %c0_i32_0 : i32, i32
  }
  func.func @transform_3(%arg0: i32) -> (i32, i32) {
    %c0_i32 = arith.constant 0 : i32
    %c0_i32_0 = arith.constant 0 : i32
    %c0_i32_1 = arith.constant 0 : i32
    return %c0_i32, %c0_i32_0 : i32, i32
  }
  func.func @transform_4(%arg0: i32) -> (i32, i32) {
    %c0_i32 = arith.constant 0 : i32
    %c0_i32_0 = arith.constant 0 : i32
    %c0_i32_1 = arith.constant 0 : i32
    return %c0_i32, %c0_i32_0 : i32, i32
  }
  func.func @transform_5(%arg0: i32) -> (i32, i32) {
    %c0_i32 = arith.constant 0 : i32
    %c0_i32_0 = arith.constant 0 : i32
    %c0_i32_1 = arith.constant 0 : i32
    return %c0_i32, %c0_i32_0 : i32, i32
  }
  func.func @transform_6(%arg0: i32) -> (i32, i32) {
    %c0_i32 = arith.constant 0 : i32
    %c0_i32_0 = arith.constant 0 : i32
    %c0_i32_1 = arith.constant 0 : i32
    return %c0_i32, %c0_i32_0 : i32, i32
  }
  func.func @transform_7(%arg0: i32) -> (i32, i32) {
    %c0_i32 = arith.constant 0 : i32
    %c0_i32_0 = arith.constant 0 : i32
    %c0_i32_1 = arith.constant 0 : i32
    return %c0_i32, %c0_i32_0 : i32, i32
  }
  func.func @transform_8(%arg0: i32) -> (i32, i32) {
    %c0_i32 = arith.constant 0 : i32
    %c0_i32_0 = arith.constant 0 : i32
    %c0_i32_1 = arith.constant 0 : i32
    return %c0_i32, %c0_i32_0 : i32, i32
  }
  func.func @transform_9(%arg0: i32) -> (i32, i32) {
    %c0_i32 = arith.constant 0 : i32
    %c0_i32_0 = arith.constant 0 : i32
    return %arg0, %c0_i32 : i32, i32
  }
}

module attributes {stable_mosaic.version = 11 : i64} {
  func.func @_rfaconv_kernel(%arg0: i32, %arg1: memref<128x36xbf16, #tpu.memory_space<vmem>>, %arg2: memref<36x36xf32, #tpu.memory_space<vmem>>, %arg3: memref<36x36xf32, #tpu.memory_space<vmem>>, %arg4: memref<36x36xf32, #tpu.memory_space<vmem>>, %arg5: memref<36x36xf32, #tpu.memory_space<vmem>>, %arg6: memref<36x36xf32, #tpu.memory_space<vmem>>, %arg7: memref<1x36xf32, #tpu.memory_space<vmem>>, %arg8: memref<36x8xbf16, #tpu.memory_space<vmem>>, %arg9: memref<1x8xf32, #tpu.memory_space<vmem>>, %arg10: memref<128x8xf32, #tpu.memory_space<vmem>>) attributes {dimension_semantics = [#tpu.dimension_semantics<parallel>], iteration_bounds = array<i64: 4>, scalar_prefetch = 0 : i64, scratch_operands = 0 : i64, tpu.core_type = #tpu.core_type<tc>, window_params = [{transform_indices = @transform_0, window_bounds = array<i64: 128, 36>}, {pipeline_mode = #tpu.pipeline_mode<synchronous>, transform_indices = @transform_1, window_bounds = array<i64: 36, 36>}, {pipeline_mode = #tpu.pipeline_mode<synchronous>, transform_indices = @transform_2, window_bounds = array<i64: 36, 36>}, {pipeline_mode = #tpu.pipeline_mode<synchronous>, transform_indices = @transform_3, window_bounds = array<i64: 36, 36>}, {pipeline_mode = #tpu.pipeline_mode<synchronous>, transform_indices = @transform_4, window_bounds = array<i64: 36, 36>}, {pipeline_mode = #tpu.pipeline_mode<synchronous>, transform_indices = @transform_5, window_bounds = array<i64: 36, 36>}, {pipeline_mode = #tpu.pipeline_mode<synchronous>, transform_indices = @transform_6, window_bounds = array<i64: 1, 36>}, {pipeline_mode = #tpu.pipeline_mode<synchronous>, transform_indices = @transform_7, window_bounds = array<i64: 36, 8>}, {pipeline_mode = #tpu.pipeline_mode<synchronous>, transform_indices = @transform_8, window_bounds = array<i64: 1, 8>}, {transform_indices = @transform_9, window_bounds = array<i64: 128, 8>}]} {
    %c0 = arith.constant 0 : index
    %c0_0 = arith.constant 0 : index
    %0 = vector.load %arg1[%c0, %c0_0] : memref<128x36xbf16, #tpu.memory_space<vmem>>, vector<128x36xbf16>
    %1 = arith.extf %0 : vector<128x36xbf16> to vector<128x36xf32>
    %c0_1 = arith.constant 0 : index
    %c0_2 = arith.constant 0 : index
    %2 = vector.load %arg2[%c0_1, %c0_2] : memref<36x36xf32, #tpu.memory_space<vmem>>, vector<36x36xf32>
    %cst = arith.constant dense<0.000000e+00> : vector<128x36xf32>
    %3 = tpu.matmul %1, %2, %cst {dimension_numbers = #tpu.dot_dimension_numbers<[1], [0], [0], [1], [0, 0, 1, 1], [], []>} : vector<128x36xf32>, vector<36x36xf32>, vector<128x36xf32> -> vector<128x36xf32>
    %c0_3 = arith.constant 0 : index
    %c0_4 = arith.constant 0 : index
    %4 = vector.load %arg4[%c0_3, %c0_4] : memref<36x36xf32, #tpu.memory_space<vmem>>, vector<36x36xf32>
    %cst_5 = arith.constant dense<0.000000e+00> : vector<128x36xf32>
    %5 = tpu.matmul %1, %4, %cst_5 {dimension_numbers = #tpu.dot_dimension_numbers<[1], [0], [0], [1], [0, 0, 1, 1], [], []>} : vector<128x36xf32>, vector<36x36xf32>, vector<128x36xf32> -> vector<128x36xf32>
    %c0_6 = arith.constant 0 : index
    %c0_7 = arith.constant 0 : index
    %6 = vector.load %arg5[%c0_6, %c0_7] : memref<36x36xf32, #tpu.memory_space<vmem>>, vector<36x36xf32>
    %cst_8 = arith.constant dense<0.000000e+00> : vector<128x36xf32>
    %7 = tpu.matmul %1, %6, %cst_8 {dimension_numbers = #tpu.dot_dimension_numbers<[1], [0], [0], [1], [0, 0, 1, 1], [], []>} : vector<128x36xf32>, vector<36x36xf32>, vector<128x36xf32> -> vector<128x36xf32>
    %8 = arith.maximumf %5, %7 : vector<128x36xf32>
    %9 = arith.subf %3, %8 : vector<128x36xf32>
    %10 = math.exp %9 : vector<128x36xf32>
    %c0_9 = arith.constant 0 : index
    %c0_10 = arith.constant 0 : index
    %11 = vector.load %arg6[%c0_9, %c0_10] : memref<36x36xf32, #tpu.memory_space<vmem>>, vector<36x36xf32>
    %cst_11 = arith.constant dense<0.000000e+00> : vector<128x36xf32>
    %12 = tpu.matmul %10, %11, %cst_11 {dimension_numbers = #tpu.dot_dimension_numbers<[1], [0], [0], [1], [0, 0, 1, 1], [], []>} : vector<128x36xf32>, vector<36x36xf32>, vector<128x36xf32> -> vector<128x36xf32>
    %13 = tpu.reciprocal %12 {approx = true} : vector<128x36xf32> -> vector<128x36xf32>
    %14 = arith.mulf %10, %13 : vector<128x36xf32>
    %c0_12 = arith.constant 0 : index
    %c0_13 = arith.constant 0 : index
    %15 = vector.load %arg3[%c0_12, %c0_13] : memref<36x36xf32, #tpu.memory_space<vmem>>, vector<36x36xf32>
    %cst_14 = arith.constant dense<0.000000e+00> : vector<128x36xf32>
    %16 = tpu.matmul %1, %15, %cst_14 {dimension_numbers = #tpu.dot_dimension_numbers<[1], [0], [0], [1], [0, 0, 1, 1], [], []>} : vector<128x36xf32>, vector<36x36xf32>, vector<128x36xf32> -> vector<128x36xf32>
    %c0_15 = arith.constant 0 : index
    %c0_16 = arith.constant 0 : index
    %17 = vector.load %arg7[%c0_15, %c0_16] : memref<1x36xf32, #tpu.memory_space<vmem>>, vector<1x36xf32>
    %18 = vector.broadcast %17 : vector<1x36xf32> to vector<128x36xf32>
    %19 = arith.addf %16, %18 : vector<128x36xf32>
    %cst_17 = arith.constant 0.000000e+00 : f32
    %20 = vector.broadcast %cst_17 : f32 to vector<128x36xf32>
    %21 = arith.maximumf %19, %20 : vector<128x36xf32>
    %22 = arith.mulf %21, %14 : vector<128x36xf32>
    %23 = arith.truncf %22 : vector<128x36xf32> to vector<128x36xbf16>
    %c0_18 = arith.constant 0 : index
    %c0_19 = arith.constant 0 : index
    %24 = vector.load %arg8[%c0_18, %c0_19] : memref<36x8xbf16, #tpu.memory_space<vmem>>, vector<36x8xbf16>
    %cst_20 = arith.constant dense<0.000000e+00> : vector<128x8xf32>
    %25 = tpu.matmul %23, %24, %cst_20 {dimension_numbers = #tpu.dot_dimension_numbers<[1], [0], [0], [1], [0, 0, 1, 1], [], []>} : vector<128x36xbf16>, vector<36x8xbf16>, vector<128x8xf32> -> vector<128x8xf32>
    %c0_21 = arith.constant 0 : index
    %c0_22 = arith.constant 0 : index
    %26 = vector.load %arg9[%c0_21, %c0_22] : memref<1x8xf32, #tpu.memory_space<vmem>>, vector<1x8xf32>
    %27 = vector.broadcast %26 : vector<1x8xf32> to vector<128x8xf32>
    %28 = arith.addf %25, %27 : vector<128x8xf32>
    %c0_23 = arith.constant 0 : index
    %c0_24 = arith.constant 0 : index
    %29 = vector.load %arg10[%c0_23, %c0_24] : memref<128x8xf32, #tpu.memory_space<vmem>>, vector<128x8xf32>
    tpu.vector_store %arg10[%c0_23, %c0_24], %28 {strides = array<i32>} : memref<128x8xf32, #tpu.memory_space<vmem>>, vector<128x8xf32>,
    return
  }
  func.func @transform_0(%arg0: i32) -> (i32, i32) {
    %c0_i32 = arith.constant 0 : i32
    %c0_i32_0 = arith.constant 0 : i32
    return %arg0, %c0_i32 : i32, i32
  }
  func.func @transform_1(%arg0: i32) -> (i32, i32) {
    %c0_i32 = arith.constant 0 : i32
    %c0_i32_0 = arith.constant 0 : i32
    %c0_i32_1 = arith.constant 0 : i32
    return %c0_i32, %c0_i32_0 : i32, i32
  }
  func.func @transform_2(%arg0: i32) -> (i32, i32) {
    %c0_i32 = arith.constant 0 : i32
    %c0_i32_0 = arith.constant 0 : i32
    %c0_i32_1 = arith.constant 0 : i32
    return %c0_i32, %c0_i32_0 : i32, i32
  }
  func.func @transform_3(%arg0: i32) -> (i32, i32) {
    %c0_i32 = arith.constant 0 : i32
    %c0_i32_0 = arith.constant 0 : i32
    %c0_i32_1 = arith.constant 0 : i32
    return %c0_i32, %c0_i32_0 : i32, i32
  }
  func.func @transform_4(%arg0: i32) -> (i32, i32) {
    %c0_i32 = arith.constant 0 : i32
    %c0_i32_0 = arith.constant 0 : i32
    %c0_i32_1 = arith.constant 0 : i32
    return %c0_i32, %c0_i32_0 : i32, i32
  }
  func.func @transform_5(%arg0: i32) -> (i32, i32) {
    %c0_i32 = arith.constant 0 : i32
    %c0_i32_0 = arith.constant 0 : i32
    %c0_i32_1 = arith.constant 0 : i32
    return %c0_i32, %c0_i32_0 : i32, i32
  }
  func.func @transform_6(%arg0: i32) -> (i32, i32) {
    %c0_i32 = arith.constant 0 : i32
    %c0_i32_0 = arith.constant 0 : i32
    %c0_i32_1 = arith.constant 0 : i32
    return %c0_i32, %c0_i32_0 : i32, i32
  }
  func.func @transform_7(%arg0: i32) -> (i32, i32) {
    %c0_i32 = arith.constant 0 : i32
    %c0_i32_0 = arith.constant 0 : i32
    %c0_i32_1 = arith.constant 0 : i32
    return %c0_i32, %c0_i32_0 : i32, i32
  }
  func.func @transform_8(%arg0: i32) -> (i32, i32) {
    %c0_i32 = arith.constant 0 : i32
    %c0_i32_0 = arith.constant 0 : i32
    %c0_i32_1 = arith.constant 0 : i32
    return %c0_i32, %c0_i32_0 : i32, i32
  }
  func.func @transform_9(%arg0: i32) -> (i32, i32) {
    %c0_i32 = arith.constant 0 : i32
    %c0_i32_0 = arith.constant 0 : i32
    return %arg0, %c0_i32 : i32, i32
  }
}

</mosaic_0001>

<bundles_post_ra>
// kernel: tpu_custom_call.1
= control target key start
LH: loop header
LB: loop body
LE: loop exit
PB: predicated region body
PF: predicated region fallthrough
CT: control target
= control target key end

     0   :  { %s2190_s30 = smov 0   ;;  %s2642_s0 = inlined_call_operand.vmem [shape: bf16[512,36], index: 0, kind: input, shape index: {}]   ;;  %s2643_s1 = inlined_call_operand.vmem [shape: f32[36,36], index: 1, kind: input, shape index: {}]   ;;  %s2644_s2 = inlined_call_operand.vmem [shape: f32[36,36], index: 2, kind: input, shape index: {}]   ;;  %s2645_s3 = inlined_call_operand.vmem [shape: f32[36,36], index: 3, kind: input, shape index: {}]   ;;  %s2646_s4 = inlined_call_operand.vmem [shape: f32[36,36], index: 4, kind: input, shape index: {}]   ;;  %s2647_s5 = inlined_call_operand.vmem [shape: f32[36,36], index: 5, kind: input, shape index: {}]   ;;  %s2648_s6 = inlined_call_operand.vmem [shape: f32[1,36], index: 6, kind: input, shape index: {}]   ;;  %s2649_s7 = inlined_call_operand.vmem [shape: bf16[36,8], index: 7, kind: input, shape index: {}]   ;;  %s2650_s8 = inlined_call_operand.vmem [shape: f32[1,8], index: 8, kind: input, shape index: {}]   ;;  %s2651_s9 = inlined_call_operand.vmem [shape: f32[512,8], index: 9, kind: output, shape index: {}]  }
   0x1 LB: > { %s1600_s10 = sadd.s32 4294967295, %s2138_s30   ;;  %p1604_p0 = scmp.ge.s32.totalorder %s2138_s30, 1  ;;  %s2138_s30 = sphi %s2190_s30, %s19_s30  }
   0x2   : > { %p288_p1 = scmp.lt.s32.totalorder %s2138_s30, 5 }
   0x4   : > { %p289_p2 = pnand %p1604_p0, %p288_p1 }
   0x5   : > { %s1605_s15 = sshll.u32 (!%p289_p2), %s1600_s10, 4 }
   0x6   : > { %292 = sbr.rel (%p289_p2) target bundleno = 715 (0x2cb), region = 56  ;;  %p325_p3 = scmp.lt.s32.totalorder (!%p289_p2), %s1605_s15, 63 }
   0xb   : > { %v373_v0 = vld [vmem:[%s2643_s1 + $0x20] sm:$0xf]  ;;  %vm423_vm0 = vcmask 1043456   ;;  %v372_v1 = vld [vmem:[%s2643_s1 + $0x18] sm:$0xff]  ;;  %v371_v2 = vld [vmem:[%s2643_s1 + $0x10] sm:$0xff]  ;;  %s2653_s15 = smov (!%p325_p3, %s1605_s15), 63 }
   0xc   : > { %1864 = vmatprep.subr.msk.mxu0 %vm423_vm0, %v373_v0  ;;  %v576_v3 = vld [vmem:[%s2645_s3 + $0x20] sm:$0xf]  ;;  %v575_v4 = vld [vmem:[%s2645_s3 + $0x18] sm:$0xff]  ;;  %v370_v5 = vld [vmem:[%s2643_s1 + $0x8] sm:$0xff]  ;;  %s1606_s26 = sshll.u32 %s2653_s15, 2  ;;  %vm374_vm1 = vcmask 293888  }
   0xd   : > { %1865 = vmatpush3.msk.msra.mxu0 %vm423_vm0, %v373_v0  ;;  %v369_v6 = vld [vmem:[%s2643_s1] sm:$0xff]  ;;  %1898 = vmatprep.subr.msk.mxu1 %vm423_vm0, %v576_v3  ;;  %v574_v7 = vld [vmem:[%s2645_s3 + $0x10] sm:$0xff]  ;;  %s2232_s11 = scalar_lea.vmem %s2642_s0, %s1606_s26  ;;  %v728_v15 = vld [vmem:[%s2646_s4 + $0x18] sm:$0xff]  ;;  %vm1426_vm2 = vcmask 1041408   ;;  %s1608_s17 = sshll.u32 %s2653_s15, 3  ;;  %vm1527_vm3 = vcmask 64512  }
   0xe   : > { %1866 = vmatprep.subr.mxu0 %v372_v1  ;;  %1899 = vmatpush3.msk.msra.mxu1 %vm423_vm0, %v576_v3  ;;  %v1710_v8 = vld [vmem:[%s2232_s11] sm:$0xff]   ;;  %v1741_v9 = vld [vmem:[%s2232_s11 + $0x8] sm:$0xff]   ;;  %v1742_v14 = vld [vmem:[%s2232_s11 + $0x10] sm:$0xff]   ;;  %s2605_s22 = scalar_lea.vmem %s2651_s9, %s1608_s17 }
   0xf   : > { %1867 = vmatpush3.msra.mxu0 %v372_v1  ;;  %1900 = vmatprep.subr.mxu1 %v575_v4  ;;  %v2236_v10 = vunpack.c.l.bf16 %v1710_v8  ;;  %v2238_v11 = vunpack.c.h.bf16 %v1710_v8  ;;  %v729_v12 = vld [vmem:[%s2646_s4 + $0x20] sm:$0xf]  ;;  %v2243_v13 = vunpack.c.l.bf16 %v1741_v9  ;;  %v573_v16 = vld [vmem:[%s2645_s3 + $0x8] sm:$0xff]  ;;  %v2257_v17 = vunpack.c.h.bf16 %v1741_v9  ;;  %v727_v19 = vld [vmem:[%s2646_s4 + $0x10] sm:$0xff] }
  0x10   : > { %1868 = vmatprep.subr.mxu0 %v371_v2  ;;  %1901 = vmatpush3.msra.mxu1 %v575_v4  ;;  %v2262_v18 = vunpack.c.l.bf16 %v1742_v14  ;;  %v1743_v20 = vld [vmem:[%s2232_s11 + $0x18] sm:$0xff]   ;;  %v726_v21 = vld [vmem:[%s2646_s4 + $0x8] sm:$0xff]  ;;  %v572_v22 = vld [vmem:[%s2645_s3] sm:$0xff]  ;;  %v2276_v23 = vunpack.c.h.bf16 %v1742_v14 }
  0x11   : > { %1869 = vmatpush3.msra.mxu0 %v371_v2  ;;  %1902 = vmatprep.subr.mxu1 %v574_v7  ;;  %v2280_v24 = vunpack.c.l.bf16 %v1743_v20  ;;  %v725_v25 = vld [vmem:[%s2646_s4] sm:$0xff]  ;;  %v2288_v27 = vunpack.c.h.bf16 %v1743_v20  ;;  %v1745_v29 = vld [vmem:[%s2232_s11 + $0x28] sm:$0xff]   ;;  %v1746_v32 = vld [vmem:[%s2232_s11 + $0x30] sm:$0xff]  }
  0x12   : > { %1870 = vmatprep.subr.mxu0 %v370_v5  ;;  %1903 = vmatpush3.msra.mxu1 %v574_v7  ;;  %v1744_v26 = vld [vmem:[%s2232_s11 + $0x20] sm:$0xff]   ;;  %v2307_v31 = vunpack.c.l.bf16 %v1745_v29  ;;  %v2314_v33 = vunpack.c.h.bf16 %v1745_v29  ;;  %v2320_v34 = vunpack.c.l.bf16 %v1746_v32  ;;  %v1747_v35 = vld [vmem:[%s2232_s11 + $0x38] sm:$0xff]   ;;  %v2327_v36 = vunpack.c.h.bf16 %v1746_v32  ;;  %v944_v42 = vld [vmem:[%s2647_s5 + $0x10] sm:$0xff] }
  0x13   : > { %1871 = vmatpush3.msra.mxu0 %v370_v5  ;;  %1874 = vmatprep.mubr.msk.f32.mxu0 %vm374_vm1, %v2236_v10  ;;  %v2292_v28 = vunpack.c.l.bf16 %v1744_v26  ;;  %v2301_v30 = vunpack.c.h.bf16 %v1744_v26  ;;  %v2333_v37 = vunpack.c.l.bf16 %v1747_v35  ;;  %v2339_v38 = vunpack.c.h.bf16 %v1747_v35  ;;  %v946_v39 = vld [vmem:[%s2647_s5 + $0x20] sm:$0xf]  ;;  %v945_v40 = vld [vmem:[%s2647_s5 + $0x18] sm:$0xff]  ;;  %v943_v44 = vld [vmem:[%s2647_s5 + $0x8] sm:$0xff] }
  0x14   : > { %1872 = vmatprep.subr.mxu0 %v369_v6  ;;  %1904 = vmatprep.subr.mxu1 %v573_v16  ;;  %v1179_v41 = vld [vmem:[%s2644_s2 + $0x20] sm:$0xf]  ;;  %v1178_v43 = vld [vmem:[%s2644_s2 + $0x18] sm:$0xff]  ;;  %v1177_v46 = vld [vmem:[%s2644_s2 + $0x10] sm:$0xff] }
  0x15   : > { %1873 = vmatpush3.msra.mxu0 %v369_v6  ;;  %1905 = vmatpush3.msra.mxu1 %v573_v16  ;;  %v942_v45 = vld [vmem:[%s2647_s5] sm:$0xff]  ;;  %v1176_v47 = vld [vmem:[%s2644_s2 + $0x8] sm:$0xff]  ;;  %v2065_v49 = vld [vmem:[%s2649_s7 + $0x10] ss:$0 sps:$4 sm:$0x33]  }
  0x16   : > { %1875 = vmatmul.mubr.msk.f32.vlgmr.msra.gmra.mxu0 %vm374_vm1, %v2238_v11  ;;  %1932 = vmatprep.subr.msk.mxu0 %vm423_vm0, %v729_v12  ;;  %v1175_v48 = vld [vmem:[%s2644_s2] sm:$0xff]  ;;  %v2454_v50 = vsel %vm1426_vm2, %v2065_v49, 0 }
  0x17   : > { %1933 = vmatpush3.msk.msra.mxu0 %vm423_vm0, %v729_v12  ;;  %1877 = vmatprep.mubr.msk.f32.mxu0 %vm374_vm1, %v2243_v13 }
  0x18   : > { %1934 = vmatprep.subr.mxu0 %v728_v15  ;;  %1906 = vmatprep.subr.mxu1 %v572_v22 }
  0x19   : > { %1935 = vmatpush3.msra.mxu0 %v728_v15  ;;  %1907 = vmatpush3.msra.mxu1 %v572_v22 }
  0x1a   : > { %1878 = vmatmul.mubr.msk.f32.gmra.mxu0 %vm374_vm1, %v2257_v17  ;;  %1936 = vmatprep.subr.mxu0 %v727_v19 }
  0x1b   : > { %1880 = vmatprep.mubr.msk.f32.mxu0 %vm374_vm1, %v2262_v18  ;;  %1937 = vmatpush3.msra.mxu0 %v727_v19 }
  0x1c   : > { %1938 = vmatprep.subr.mxu0 %v726_v21  ;;  %1908 = vmatprep.mubr.msk.f32.mxu1 %vm374_vm1, %v2236_v10 }
  0x1d   : > { %1939 = vmatpush3.msra.mxu0 %v726_v21  ;;  %1909 = vmatmul.mubr.msk.f32.vlgmr.msra.gmra.mxu1 %vm374_vm1, %v2238_v11 }
  0x1e   : > { %1881 = vmatmul.mubr.msk.f32.gmra.mxu0 %vm374_vm1, %v2276_v23  ;;  %1940 = vmatprep.subr.mxu0 %v725_v25 }
  0x1f   : > { %1883 = vmatprep.mubr.msk.f32.mxu0 %vm374_vm1, %v2280_v24  ;;  %1941 = vmatpush3.msra.mxu0 %v725_v25 }
  0x20   : > { %1911 = vmatprep.mubr.msk.f32.mxu1 %vm374_vm1, %v2243_v13  ;;  %1966 = vmatprep.subr.msk.mxu1 %vm423_vm0, %v946_v39 }
  0x21   : > { %1912 = vmatmul.mubr.msk.f32.gmra.mxu1 %vm374_vm1, %v2257_v17  ;;  %2000 = vmatprep.subr.msk.mxu0 %vm423_vm0, %v1179_v41 }
  0x22   : > { %1884 = vmatmul.mubr.msk.f32.gmra.mxu0 %vm374_vm1, %v2288_v27  ;;  %1914 = vmatprep.mubr.msk.f32.mxu1 %vm374_vm1, %v2262_v18 }
  0x23   : > { %1886 = vmatprep.mubr.msk.f32.mxu0 %vm374_vm1, %v2292_v28  ;;  %1967 = vmatpush3.msk.msra.mxu1 %vm423_vm0, %v946_v39 }
  0x24   : > { %1968 = vmatprep.subr.mxu1 %v945_v40 }
  0x25   : > { %1915 = vmatmul.mubr.msk.f32.gmra.mxu1 %vm374_vm1, %v2276_v23 }
  0x26   : > { %1887 = vmatmul.mubr.msk.f32.gmra.mxu0 %vm374_vm1, %v2301_v30  ;;  %1917 = vmatprep.mubr.msk.f32.mxu1 %vm374_vm1, %v2280_v24 }
  0x27   : > { %1889 = vmatprep.mubr.msk.f32.mxu0 %vm374_vm1, %v2307_v31  ;;  %1969 = vmatpush3.msra.mxu1 %v945_v40 }
  0x28   : > { %1970 = vmatprep.subr.mxu1 %v944_v42 }
  0x29   : > { %1918 = vmatmul.mubr.msk.f32.gmra.mxu1 %vm374_vm1, %v2288_v27 }
  0x2a   : > { %1890 = vmatmul.mubr.msk.f32.gmra.mxu0 %vm374_vm1, %v2314_v33  ;;  %1920 = vmatprep.mubr.msk.f32.mxu1 %vm374_vm1, %v2292_v28 }
  0x2b   : > { %1892 = vmatprep.mubr.msk.f32.mxu0 %vm374_vm1, %v2320_v34  ;;  %1971 = vmatpush3.msra.mxu1 %v944_v42 }
  0x2c   : > { %1972 = vmatprep.subr.mxu1 %v943_v44 }
  0x2d   : > { %1921 = vmatmul.mubr.msk.f32.gmra.mxu1 %vm374_vm1, %v2301_v30 }
  0x2e   : > { %1893 = vmatmul.mubr.msk.f32.gmra.mxu0 %vm374_vm1, %v2327_v36  ;;  %1923 = vmatprep.mubr.msk.f32.mxu1 %vm374_vm1, %v2307_v31 }
  0x2f   : > { %1895 = vmatprep.mubr.msk.f32.mxu0 %vm374_vm1, %v2333_v37  ;;  %1973 = vmatpush3.msra.mxu1 %v943_v44 }
  0x30   : > { %1974 = vmatprep.subr.mxu1 %v942_v45 }
  0x31   : > { %1924 = vmatmul.mubr.msk.f32.gmra.mxu1 %vm374_vm1, %v2314_v33 }
  0x32   : > { %1896 = vmatmul.mubr.msk.f32.gmra.mxu0 %vm374_vm1, %v2339_v38  ;;  %1926 = vmatprep.mubr.msk.f32.mxu1 %vm374_vm1, %v2320_v34 }
  0x33   : > { %1942 = vmatprep.mubr.msk.f32.mxu0 %vm374_vm1, %v2236_v10  ;;  %1975 = vmatpush3.msra.mxu1 %v942_v45 }
  0x34   : > { %2056 = vmatprep.subr.msk.bf16.mxu1 %vm1426_vm2, %v2065_v49 }
  0x35   : > { %1927 = vmatmul.mubr.msk.f32.gmra.mxu1 %vm374_vm1, %v2327_v36 }
  0x36   : > { %1943 = vmatmul.mubr.msk.f32.vlgmr.msra.gmra.mxu0 %vm374_vm1, %v2238_v11  ;;  %1929 = vmatprep.mubr.msk.f32.mxu1 %vm374_vm1, %v2333_v37 }
  0x37   : > { %1945 = vmatprep.mubr.msk.f32.mxu0 %vm374_vm1, %v2243_v13  ;;  %2001 = vmatpush3.msk.msra.mxu0 %vm423_vm0, %v1179_v41 }
  0x38   : > { %2002 = vmatprep.subr.mxu0 %v1178_v43 }
  0x39   : > { %1930 = vmatmul.mubr.msk.f32.gmra.mxu1 %vm374_vm1, %v2339_v38  ;;  %2003 = vmatpush3.msra.mxu0 %v1178_v43 }
  0x3a   : > { %1946 = vmatmul.mubr.msk.f32.gmra.mxu0 %vm374_vm1, %v2257_v17  ;;  %2004 = vmatprep.subr.mxu0 %v1177_v46 }
  0x3b   : > { %1948 = vmatprep.mubr.msk.f32.mxu0 %vm374_vm1, %v2262_v18  ;;  %2005 = vmatpush3.msra.mxu0 %v1177_v46 }
  0x3c   : > { %2006 = vmatprep.subr.mxu0 %v1176_v47 }
  0x3d   : > { %2007 = vmatpush3.msra.mxu0 %v1176_v47 }
  0x3e   : > { %1949 = vmatmul.mubr.msk.f32.gmra.mxu0 %vm374_vm1, %v2276_v23  ;;  %2008 = vmatprep.subr.mxu0 %v1175_v48 }
  0x3f   : > { %1951 = vmatprep.mubr.msk.f32.mxu0 %vm374_vm1, %v2280_v24  ;;  %2009 = vmatpush3.msra.mxu0 %v1175_v48 }
  0x42   : > { %1952 = vmatmul.mubr.msk.f32.gmra.mxu0 %vm374_vm1, %v2288_v27 }
  0x43   : > { %1954 = vmatprep.mubr.msk.f32.mxu0 %vm374_vm1, %v2292_v28 }
  0x46   : > { %1955 = vmatmul.mubr.msk.f32.gmra.mxu0 %vm374_vm1, %v2301_v30 }
  0x47   : > { %1957 = vmatprep.mubr.msk.f32.mxu0 %vm374_vm1, %v2307_v31 }
  0x4a   : > { %1958 = vmatmul.mubr.msk.f32.gmra.mxu0 %vm374_vm1, %v2314_v33 }
  0x4b   : > { %1960 = vmatprep.mubr.msk.f32.mxu0 %vm374_vm1, %v2320_v34 }
  0x4e   : > { %1961 = vmatmul.mubr.msk.f32.gmra.mxu0 %vm374_vm1, %v2327_v36 }
  0x4f   : > { %1963 = vmatprep.mubr.msk.f32.mxu0 %vm374_vm1, %v2333_v37 }
  0x52   : > { %1964 = vmatmul.mubr.msk.f32.gmra.mxu0 %vm374_vm1, %v2339_v38 }
  0x53   : > { %2010 = vmatprep.mubr.msk.f32.mxu0 %vm374_vm1, %v2236_v10 }
  0x56   : > { %2011 = vmatmul.mubr.msk.f32.vlgmr.msra.gmra.mxu0 %vm374_vm1, %v2238_v11 }
  0x57   : > { %2013 = vmatprep.mubr.msk.f32.mxu0 %vm374_vm1, %v2243_v13 }
  0x5a   : > { %2014 = vmatmul.mubr.msk.f32.gmra.mxu0 %vm374_vm1, %v2257_v17 }
  0x5b   : > { %2016 = vmatprep.mubr.msk.f32.mxu0 %vm374_vm1, %v2262_v18 }
  0x5e   : > { %2017 = vmatmul.mubr.msk.f32.gmra.mxu0 %vm374_vm1, %v2276_v23 }
  0x5f   : > { %2019 = vmatprep.mubr.msk.f32.mxu0 %vm374_vm1, %v2280_v24 }
  0x62   : > { %2020 = vmatmul.mubr.msk.f32.gmra.mxu0 %vm374_vm1, %v2288_v27 }
  0x63   : > { %2022 = vmatprep.mubr.msk.f32.mxu0 %vm374_vm1, %v2292_v28 }
  0x66   : > { %2023 = vmatmul.mubr.msk.f32.gmra.mxu0 %vm374_vm1, %v2301_v30 }
  0x67   : > { %2025 = vmatprep.mubr.msk.f32.mxu0 %vm374_vm1, %v2307_v31 }
  0x6a   : > { %2026 = vmatmul.mubr.msk.f32.gmra.mxu0 %vm374_vm1, %v2314_v33 }
  0x6b   : > { %2028 = vmatprep.mubr.msk.f32.mxu0 %vm374_vm1, %v2320_v34 }
  0x6e   : > { %2029 = vmatmul.mubr.msk.f32.gmra.mxu0 %vm374_vm1, %v2327_v36 }
  0x6f   : > { %2031 = vmatprep.mubr.msk.f32.mxu0 %vm374_vm1, %v2333_v37 }
  0x72   : > { %2032 = vmatmul.mubr.msk.f32.gmra.mxu0 %vm374_vm1, %v2339_v38 }
  0xd6   : > { %v1876_v51 = vpop.f32.mrf.mxu0 }
  0xd8   : > { %v493_v52 = vpop.f32.mrf.mxu0 }
  0xda   : > { %v1879_v53 = vpop.f32.mrf.mxu0 }
  0xdc   : > { %v503_v54 = vpop.f32.mrf.mxu0 }
  0xdd   : > { %v1910_v57 = vpop.f32.mrf.mxu1 }
  0xde   : > { %v1882_v55 = vpop.f32.mrf.mxu0 }
  0xdf   : > { %v646_v59 = vpop.f32.mrf.mxu1 }
  0xe0   : > { %v513_v56 = vpop.f32.mrf.mxu0 }
  0xe1   : > { %v1913_v61 = vpop.f32.mrf.mxu1 }
  0xe2   : > { %v1885_v58 = vpop.f32.mrf.mxu0 }
  0xe3   : > { %v656_v63 = vpop.f32.mrf.mxu1 }
  0xe4   : > { %v523_v60 = vpop.f32.mrf.mxu0 }
  0xe5   : > { %v1916_v1 = vpop.f32.mrf.mxu1 }
  0xe6   : > { %v1888_v62 = vpop.f32.mrf.mxu0 }
  0xe7   : > { %v666_v4 = vpop.f32.mrf.mxu1 }
  0xe8   : > { %v533_v0 = vpop.f32.mrf.mxu0 }
  0xe9   : > { %v1919_v7 = vpop.f32.mrf.mxu1 }
  0xea   : > { %v2464_v2 = vpop.f32.mrf.mxu0 }
  0xeb   : > { %v676_v10 = vpop.f32.mrf.mxu1 }
  0xec   : > { %v2466_v3 = vpop.f32.mrf.mxu0 }
  0xed   : > { %v1922_v14 = vpop.f32.mrf.mxu1 }
  0xee   : > { %v2468_v5 = vpop.f32.mrf.mxu0 }
  0xef   : > { %v686_v22 = vpop.f32.mrf.mxu1 }
  0xf0   : > { %v2470_v6 = vpop.f32.mrf.mxu0 }
  0xf1   : > { %v1925_v31 = vpop.f32.mrf.mxu1 }
  0xf2   : > { %v2472_v8 = vpop.f32.mrf.mxu0 }
  0xf3   : > { %v696_v40 = vpop.f32.mrf.mxu1 }
  0xf4   : > { %v2474_v9 = vpop.f32.mrf.mxu0 }
  0xf5   : > { %v1928_v49 = vpop.f32.mrf.mxu1 }
  0xf6   : > { %v1944_v11 = vpop.f32.mrf.mxu0 }
  0xf7   : > { %v879_v12 = vmax.f32 %v1910_v57, %v1944_v11 }
  0xf8   : > { %v799_v13 = vpop.f32.mrf.mxu0 }
  0xf9   : > { %v895_v15 = vsub.f32 %v1876_v51, %v879_v12  ;;  %v878_v16 = vmax.f32 %v646_v59, %v799_v13 }
  0xfa   : > { %v1947_v17 = vpop.f32.mrf.mxu0 }
  0xfb   : > { %v894_v18 = vsub.f32 %v493_v52, %v878_v16  ;;  %v881_v19 = vmax.f32 %v1913_v61, %v1947_v17  ;;  %v912_v20 = vmul.f32 1.442695, %v895_v15  ;;  %v706_v61 = vpop.f32.mrf.mxu1 }
  0xfc   : > { %v809_v21 = vpop.f32.mrf.mxu0 }
  0xfd   : > { %v910_v23 = vmul.f32 1.442695, %v894_v18  ;;  %v897_v24 = vsub.f32 %v1879_v53, %v881_v19  ;;  %v880_v25 = vmax.f32 %v656_v63, %v809_v21 }
  0xfe   : > { %v1950_v26 = vpop.f32.mrf.mxu0 }
  0xff   : > { %2068 = vpow2.f32 %v910_v23  ;;  %v896_v27 = vsub.f32 %v503_v54, %v880_v25  ;;  %v883_v28 = vmax.f32 %v1916_v1, %v1950_v26  ;;  %v916_v29 = vmul.f32 1.442695, %v897_v24 }
 0x100   : > { %2070 = vpow2.f32 %v912_v20  ;;  %v819_v30 = vpop.f32.mrf.mxu0 }
 0x101   : > { %v914_v32 = vmul.f32 1.442695, %v896_v27  ;;  %v899_v33 = vsub.f32 %v1882_v55, %v883_v28  ;;  %v882_v34 = vmax.f32 %v666_v4, %v819_v30 }
 0x102   : > { %v1953_v35 = vpop.f32.mrf.mxu0 }
 0x103   : > { %2072 = vpow2.f32 %v914_v32  ;;  %v898_v36 = vsub.f32 %v513_v56, %v882_v34  ;;  %v885_v37 = vmax.f32 %v1919_v7, %v1953_v35  ;;  %v920_v38 = vmul.f32 1.442695, %v899_v33  ;;  %v2066_v35 = vld [vmem:[%s2649_s7 + $0x8] sm:$0xff]  }
 0x104   : > { %2074 = vpow2.f32 %v916_v29  ;;  %v829_v39 = vpop.f32.mrf.mxu0 }
 0x105   : > { %v918_v41 = vmul.f32 1.442695, %v898_v36  ;;  %v901_v42 = vsub.f32 %v1885_v58, %v885_v37  ;;  %v884_v43 = vmax.f32 %v676_v10, %v829_v39  ;;  %v2067_v36 = vld [vmem:[%s2649_s7] sm:$0xff]  }
 0x106   : > { %v1956_v44 = vpop.f32.mrf.mxu0 }
 0x107   : > { %2076 = vpow2.f32 %v918_v41  ;;  %v900_v45 = vsub.f32 %v523_v60, %v884_v43  ;;  %v887_v46 = vmax.f32 %v1922_v14, %v1956_v44  ;;  %v924_v47 = vmul.f32 1.442695, %v901_v42 }
 0x108   : > { %2078 = vpow2.f32 %v920_v38  ;;  %v839_v48 = vpop.f32.mrf.mxu0 }
 0x109   : > { %v922_v51 = vmul.f32 1.442695, %v900_v45  ;;  %v903_v52 = vsub.f32 %v1888_v62, %v887_v46  ;;  %v886_v53 = vmax.f32 %v686_v22, %v839_v48 }
 0x10a   : > { %v1959_v54 = vpop.f32.mrf.mxu0 }
 0x10b   : > { %2080 = vpow2.f32 %v922_v51  ;;  %v902_v55 = vsub.f32 %v533_v0, %v886_v53  ;;  %v889_v56 = vmax.f32 %v1925_v31, %v1959_v54  ;;  %v928_v58 = vmul.f32 1.442695, %v903_v52  ;;  %v2556_v51 = vld [vmem:[%s2648_s6] ss:$0 sm:$0xff] }
 0x10c   : > { %v2476_v57 = vpop.eup %2068  ;;  %2082 = vpow2.f32 %v924_v47  ;;  %v849_v59 = vpop.f32.mrf.mxu0 }
 0x10d   : > { %v2478_v63 = vpop.eup %2070  ;;  %v926_v60 = vmul.f32 1.442695, %v902_v55  ;;  %v905_v1 = vsub.f32 %v2464_v2, %v889_v56  ;;  %v888_v4 = vmax.f32 %v696_v40, %v849_v59  ;;  %1976 = vmatprep.mubr.msk.f32.mxu1 %vm374_vm1, %v2476_v57  ;;  %v1931_v2 = vpop.f32.mrf.mxu1 }
 0x10e   : > { %v1962_v62 = vpop.f32.mrf.mxu0  ;;  %1977 = vmatmul.mubr.msk.f32.vlgmr.msra.gmra.mxu1 %vm374_vm1, %v2478_v63 }
 0x10f   : > { %2084 = vpow2.f32 %v926_v60  ;;  %v904_v0 = vsub.f32 %v2466_v3, %v888_v4  ;;  %v891_v7 = vmax.f32 %v1928_v49, %v1962_v62  ;;  %2035 = vmatpush3.bf16.msra.mxu1 %v2454_v50  ;;  %v932_v11 = vmul.f32 1.442695, %v905_v1  ;;  %v716_v20 = vpop.f32.mrf.mxu1 }
 0x110   : > { %v2487_v10 = vpop.eup %2072  ;;  %2086 = vpow2.f32 %v928_v58  ;;  %v859_v12 = vpop.f32.mrf.mxu0  ;;  %2036 = vmatprep.subr.bf16.mxu1 %v2066_v35 }
 0x111   : > { %v2489_v13 = vpop.eup %2074  ;;  %v930_v14 = vmul.f32 1.442695, %v904_v0  ;;  %v907_v15 = vsub.f32 %v2468_v5, %v891_v7  ;;  %v890_v16 = vmax.f32 %v706_v61, %v859_v12  ;;  %1979 = vmatprep.mubr.msk.f32.mxu1 %vm374_vm1, %v2487_v10 }
 0x112   : > { %v1965_v17 = vpop.f32.mrf.mxu0  ;;  %1980 = vmatmul.mubr.msk.f32.gmra.mxu1 %vm374_vm1, %v2489_v13 }
 0x113   : > { %2088 = vpow2.f32 %v930_v14  ;;  %v906_v50 = vsub.f32 %v2470_v6, %v890_v16  ;;  %v893_v3 = vmax.f32 %v1931_v2, %v1965_v17  ;;  %v936_v19 = vmul.f32 1.442695, %v907_v15  ;;  %2037 = vmatpush3.bf16.msra.mxu1 %v2066_v35 }
 0x114   : > { %v2497_v18 = vpop.eup %2076  ;;  %2090 = vpow2.f32 %v932_v11  ;;  %v869_v21 = vpop.f32.mrf.mxu0  ;;  %2038 = vmatprep.subr.bf16.mxu1 %v2067_v36 }
 0x115   : > { %v2499_v22 = vpop.eup %2078  ;;  %v934_v5 = vmul.f32 1.442695, %v906_v50  ;;  %v909_v23 = vsub.f32 %v2472_v8, %v893_v3  ;;  %v892_v24 = vmax.f32 %v716_v20, %v869_v21  ;;  %1982 = vmatprep.mubr.msk.f32.mxu1 %vm374_vm1, %v2497_v18 }
 0x116   : > { %1983 = vmatmul.mubr.msk.f32.gmra.mxu1 %vm374_vm1, %v2499_v22  ;;  %v2012_v37 = vpop.f32.mrf.mxu0 }
 0x117   : > { %2092 = vpow2.f32 %v934_v5  ;;  %v908_v6 = vsub.f32 %v2474_v9, %v892_v24  ;;  %v940_v26 = vmul.f32 1.442695, %v909_v23  ;;  %2039 = vmatpush3.bf16.msra.mxu1 %v2067_v36  ;;  %v1262_v54 = vadd.f32 %v2012_v37, %v2556_v51 }
 0x118   : > { %v2507_v25 = vpop.eup %2080  ;;  %2094 = vpow2.f32 %v936_v19  ;;  %v1256_v38 = vpop.f32.mrf.mxu0 }
 0x119   : > { %v2509_v27 = vpop.eup %2082  ;;  %v938_v28 = vmul.f32 1.442695, %v908_v6  ;;  %1985 = vmatprep.mubr.msk.f32.mxu1 %vm374_vm1, %v2507_v25  ;;  %v1257_v56 = vadd.f32 %v2556_v51, %v1256_v38  ;;  %v1336_v4 = vmax.f32 %v1262_v54, 0.0 }
 0x11a   : > { %1986 = vmatmul.mubr.msk.f32.gmra.mxu1 %vm374_vm1, %v2509_v27  ;;  %v2015_v39 = vpop.f32.mrf.mxu0 }
 0x11b   : > { %2096 = vpow2.f32 %v938_v28  ;;  %v1272_v61 = vadd.f32 %v2015_v39, %v2556_v51  ;;  %v1335_v12 = vmax.f32 %v1257_v56, 0.0 }
 0x11c   : > { %v2515_v8 = vpop.eup %2084  ;;  %2098 = vpow2.f32 %v940_v26  ;;  %v1266_v40 = vpop.f32.mrf.mxu0 }
 0x11d   : > { %v2517_v29 = vpop.eup %2086  ;;  %1988 = vmatprep.mubr.msk.f32.mxu1 %vm374_vm1, %v2515_v8  ;;  %v1267_v7 = vadd.f32 %v2556_v51, %v1266_v40  ;;  %v1338_v14 = vmax.f32 %v1272_v61, 0.0 }
 0x11e   : > { %1989 = vmatmul.mubr.msk.f32.gmra.mxu1 %vm374_vm1, %v2517_v29  ;;  %v2018_v41 = vpop.f32.mrf.mxu0 }
 0x11f   : > { %v1282_v16 = vadd.f32 %v2018_v41, %v2556_v51  ;;  %v1337_v20 = vmax.f32 %v1267_v7, 0.0 }
 0x120   : > { %v2523_v9 = vpop.eup %2088  ;;  %v1276_v42 = vpop.f32.mrf.mxu0 }
 0x121   : > { %v2525_v30 = vpop.eup %2090  ;;  %1991 = vmatprep.mubr.msk.f32.mxu1 %vm374_vm1, %v2523_v9  ;;  %v1340_v6 = vmax.f32 %v1282_v16, 0.0 }
 0x122   : > { %1992 = vmatmul.mubr.msk.f32.gmra.mxu1 %vm374_vm1, %v2525_v30  ;;  %v2021_v45 = vpop.f32.mrf.mxu0 }
 0x123   : > { %v1292_v28 = vadd.f32 %v2021_v45, %v2556_v51 }
 0x124   : > { %v2531_v31 = vpop.eup %2092  ;;  %v1286_v48 = vpop.f32.mrf.mxu0 }
 0x125   : > { %v2533_v32 = vpop.eup %2094  ;;  %1994 = vmatprep.mubr.msk.f32.mxu1 %vm374_vm1, %v2531_v31 }
 0x126   : > { %1995 = vmatmul.mubr.msk.f32.gmra.mxu1 %vm374_vm1, %v2533_v32  ;;  %v2024_v53 = vpop.f32.mrf.mxu0 }
 0x128   : > { %v2539_v33 = vpop.eup %2096  ;;  %v1296_v60 = vpop.f32.mrf.mxu0 }
 0x129   : > { %v2541_v34 = vpop.eup %2098  ;;  %1997 = vmatprep.mubr.msk.f32.mxu1 %vm374_vm1, %v2539_v33 }
 0x12a   : > { %1998 = vmatmul.mubr.msk.f32.gmra.mxu1 %vm374_vm1, %v2541_v34  ;;  %v2027_v17 = vpop.f32.mrf.mxu0 }
 0x12c   : > { %v1306_v35 = vpop.f32.mrf.mxu0 }
 0x1ce   : > { %v1978_v43 = vpop.f32.mrf.mxu1 }
 0x1cf   : > { %2100 = vrcp.f32 %v1978_v43 }
 0x1d0   : > { %v1064_v44 = vpop.f32.mrf.mxu1 }
 0x1d1   : > { %2102 = vrcp.f32 %v1064_v44  ;;  %v1342_v44 = vmax.f32 %v1292_v28, 0.0 }
 0x1d2   : > { %v1981_v46 = vpop.f32.mrf.mxu1 }
 0x1d3   : > { %2104 = vrcp.f32 %v1981_v46  ;;  %v1302_v46 = vadd.f32 %v2024_v53, %v2556_v51 }
 0x1d4   : > { %v1074_v47 = vpop.f32.mrf.mxu1 }
 0x1d5   : > { %2106 = vrcp.f32 %v1074_v47  ;;  %v2030_v47 = vpop.f32.mrf.mxu0  ;;  %v1344_v61 = vmax.f32 %v1302_v46, 0.0 }
 0x1d6   : > { %v1984_v49 = vpop.f32.mrf.mxu1 }
 0x1d7   : > { %2108 = vrcp.f32 %v1984_v49 }
 0x1d8   : > { %v1084_v52 = vpop.f32.mrf.mxu1 }
 0x1d9   : > { %2110 = vrcp.f32 %v1084_v52 }
 0x1da   : > { %v1987_v55 = vpop.f32.mrf.mxu1 }
 0x1db   : > { %2112 = vrcp.f32 %v1987_v55 }
 0x1dc   : > { %v2101_v58 = vpop.eup %2100  ;;  %v1094_v59 = vpop.f32.mrf.mxu1 }
 0x1dd   : > { %v1160_v1 = vmul.f32 %v2101_v58, %v2478_v63  ;;  %2114 = vrcp.f32 %v1094_v59  ;;  %v1297_v58 = vadd.f32 %v2556_v51, %v1296_v60  ;;  %v1307_v60 = vadd.f32 %v2556_v51, %v1306_v35 }
 0x1de   : > { %v2103_v62 = vpop.eup %2102  ;;  %v1990_v0 = vpop.f32.mrf.mxu1 }
 0x1df   : > { %v1159_v11 = vmul.f32 %v2103_v62, %v2476_v57  ;;  %2116 = vrcp.f32 %v1990_v0  ;;  %v1352_v50 = vmul.f32 %v1336_v4, %v1160_v1  ;;  %v1277_v57 = vadd.f32 %v2556_v51, %v1276_v42  ;;  %v1316_v4 = vpop.f32.mrf.mxu0 }
 0x1e0   : > { %v2105_v2 = vpop.eup %2104  ;;  %v1104_v15 = vpop.f32.mrf.mxu1  ;;  %v1312_v1 = vadd.f32 %v2027_v17, %v2556_v51 }
 0x1e1   : > { %v1351_v3 = vmul.f32 %v1335_v12, %v1159_v11  ;;  %v1162_v63 = vmul.f32 %v2105_v2, %v2489_v13  ;;  %2118 = vrcp.f32 %v1104_v15  ;;  %v1339_v42 = vmax.f32 %v1277_v57, 0.0  ;;  %v2033_v15 = vpop.f32.mrf.mxu0 }
 0x1e2   : > { %v2107_v19 = vpop.eup %2106  ;;  %v1993_v21 = vpop.f32.mrf.mxu1  ;;  %v1343_v12 = vmax.f32 %v1297_v58, 0.0 }
 0x1e3   : > { %v1367_v5 = vpack.c.bf16 %v1352_v50, %v1351_v3  ;;  %v1161_v23 = vmul.f32 %v2107_v19, %v2487_v10  ;;  %2120 = vrcp.f32 %v1993_v21  ;;  %v1354_v36 = vmul.f32 %v1338_v14, %v1162_v63 }
 0x1e4   : > { %v2109_v24 = vpop.eup %2108  ;;  %v1114_v26 = vpop.f32.mrf.mxu1  ;;  %v1287_v10 = vadd.f32 %v2556_v51, %v1286_v48  ;;  %v1322_v14 = vadd.f32 %v2030_v47, %v2556_v51  ;;  %v1346_v3 = vmax.f32 %v1312_v1, 0.0 }
 0x1e5   : > { %v1353_v37 = vmul.f32 %v1337_v20, %v1161_v23  ;;  %v1164_v13 = vmul.f32 %v2109_v24, %v2499_v22  ;;  %2122 = vrcp.f32 %v1114_v26  ;;  %2040 = vmatprep.mubr.msk.bf16.mxu1 %vm374_vm1, %v1367_v5  ;;  %v1345_v20 = vmax.f32 %v1307_v60, 0.0  ;;  %v1326_v23 = vpop.f32.mrf.mxu0 }
 0x1e6   : > { %v2111_v38 = vpop.eup %2110  ;;  %v1996_v39 = vpop.f32.mrf.mxu1  ;;  %v1341_v48 = vmax.f32 %v1287_v10, 0.0  ;;  %v1348_v5 = vmax.f32 %v1322_v14, 0.0  ;;  %v1332_v26 = vadd.f32 %v2033_v15, %v2556_v51 }
 0x1e7   : > { %v1368_v40 = vpack.c.bf16 %v1354_v36, %v1353_v37  ;;  %v1163_v41 = vmul.f32 %v2111_v38, %v2497_v18  ;;  %2124 = vrcp.f32 %v1996_v39  ;;  %v1356_v49 = vmul.f32 %v1340_v6, %v1164_v13 }
 0x1e8   : > { %v2113_v43 = vpop.eup %2112  ;;  %v1124_v45 = vpop.f32.mrf.mxu1  ;;  %v1350_v10 = vmax.f32 %v1332_v26, 0.0 }
 0x1e9   : > { %v1355_v22 = vmul.f32 %v1339_v42, %v1163_v41  ;;  %v1166_v52 = vmul.f32 %v2113_v43, %v2509_v27  ;;  %2126 = vrcp.f32 %v1124_v45  ;;  %2041 = vmatmul.mubr.msk.bf16.vlgmr.msra.gmra.mxu1 %vm374_vm1, %v1368_v40 }
 0x1ea   : > { %v2115_v54 = vpop.eup %2114  ;;  %v1999_v55 = vpop.f32.mrf.mxu1 }
 0x1eb   : > { %v1369_v56 = vpack.c.bf16 %v1356_v49, %v1355_v22  ;;  %v1165_v18 = vmul.f32 %v2115_v54, %v2507_v25  ;;  %2128 = vrcp.f32 %v1999_v55  ;;  %v1358_v62 = vmul.f32 %v1342_v44, %v1166_v52 }
 0x1ec   : > { %v2117_v59 = vpop.eup %2116  ;;  %v1134_v53 = vpop.f32.mrf.mxu1 }
 0x1ed   : > { %v1357_v27 = vmul.f32 %v1341_v48, %v1165_v18  ;;  %v1168_v0 = vmul.f32 %v2117_v59, %v2517_v29  ;;  %2130 = vrcp.f32 %v1134_v53  ;;  %2044 = vmatprep.mubr.msk.bf16.mxu1 %vm374_vm1, %v1369_v56 }
 0x1ee   : > { %v2119_v7 = vpop.eup %2118 }
 0x1ef   : > { %v1370_v11 = vpack.c.bf16 %v1358_v62, %v1357_v27  ;;  %v1167_v25 = vmul.f32 %v2119_v7, %v2515_v8  ;;  %v1360_v16 = vmul.f32 %v1344_v61, %v1168_v0  ;;  %v1317_v8 = vadd.f32 %v2556_v51, %v1316_v4 }
 0x1f0   : > { %v2121_v2 = vpop.eup %2120 }
 0x1f1   : > { %v1359_v17 = vmul.f32 %v1343_v12, %v1167_v25  ;;  %v1170_v50 = vmul.f32 %v2121_v2, %v2525_v30  ;;  %2045 = vmatmul.mubr.msk.bf16.gmra.mxu1 %vm374_vm1, %v1370_v11  ;;  %v1347_v36 = vmax.f32 %v1317_v8, 0.0 }
 0x1f2   : > { %v2123_v29 = vpop.eup %2122 }
 0x1f3   : > { %v1371_v63 = vpack.c.bf16 %v1360_v16, %v1359_v17  ;;  %v1169_v19 = vmul.f32 %v2123_v29, %v2523_v9  ;;  %v1362_v57 = vmul.f32 %v1346_v3, %v1170_v50  ;;  %v1327_v9 = vadd.f32 %v2556_v51, %v1326_v23 }
 0x1f4   : > { %v2125_v21 = vpop.eup %2124 }
 0x1f5   : > { %v1361_v24 = vmul.f32 %v1345_v20, %v1169_v19  ;;  %v1172_v6 = vmul.f32 %v2125_v21, %v2533_v32  ;;  %2048 = vmatprep.mubr.msk.bf16.mxu1 %vm374_vm1, %v1371_v63  ;;  %v1349_v42 = vmax.f32 %v1327_v9, 0.0 }
 0x1f6   : > { %v2127_v30 = vpop.eup %2126 }
 0x1f7   : > { %v1372_v28 = vpack.c.bf16 %v1362_v57, %v1361_v24  ;;  %v1171_v35 = vmul.f32 %v2127_v30, %v2531_v31  ;;  %v1364_v13 = vmul.f32 %v1348_v5, %v1172_v6 }
 0x1f8   : > { %v2129_v37 = vpop.eup %2128 }
 0x1f9   : > { %v1363_v38 = vmul.f32 %v1347_v36, %v1171_v35  ;;  %v1174_v39 = vmul.f32 %v2129_v37, %v2541_v34  ;;  %2049 = vmatmul.mubr.msk.bf16.gmra.mxu1 %vm374_vm1, %v1372_v28  ;;  %v1695_v34 = vld [vmem:[%s2650_s8] ss:$0 sm:$0xff] }
 0x1fa   : > { %v2131_v32 = vpop.eup %2130 }
 0x1fb   : > { %v1373_v40 = vpack.c.bf16 %v1364_v13, %v1363_v38  ;;  %v1173_v41 = vmul.f32 %v2131_v32, %v2539_v33  ;;  %v1366_v43 = vmul.f32 %v1350_v10, %v1174_v39 }
 0x1fd   : > { %v1365_v44 = vmul.f32 %v1349_v42, %v1173_v41  ;;  %2052 = vmatprep.mubr.msk.bf16.mxu1 %vm374_vm1, %v1373_v40 }
 0x1ff   : > { %v1374_v31 = vpack.c.bf16 %v1366_v43, %v1365_v44 }
 0x201   : > { %2053 = vmatmul.mubr.msk.bf16.gmra.mxu1 %vm374_vm1, %v1374_v31 }
 0x2a9   : > { %v2042_v33 = vpop.f32.mrf.mxu1 }
 0x2aa   : > { %v1473_v51 = vadd.f32 %v2042_v33, %v1695_v34 }
 0x2ab   : > { %v1464_v45 = vpop.f32.mrf.mxu1 }
 0x2ac   : > { %1530 = vst.msk [vmem:[%s2605_s22 + $0x10] sm:$0xff] %vm1527_vm3, %v1473_v51  ;;  %v1465_v46 = vadd.f32 %v1695_v34, %v1464_v45 }
 0x2ad   : > { %v2043_v47 = vpop.f32.mrf.mxu1 }
 0x2ae   : > { %1528 = vst.msk [vmem:[%s2605_s22] sm:$0xff] %vm1527_vm3, %v1465_v46  ;;  %v1476_v49 = vadd.f32 %v2043_v47, %v1695_v34 }
 0x2af   : > { %v1467_v22 = vpop.f32.mrf.mxu1 }
 0x2b0   : > { %1531 = vst.msk [vmem:[%s2605_s22 + $0x18] sm:$0xff] %vm1527_vm3, %v1476_v49  ;;  %v1468_v52 = vadd.f32 %v1695_v34, %v1467_v22 }
 0x2b1   : > { %v2046_v54 = vpop.f32.mrf.mxu1 }
 0x2b2   : > { %1529 = vst.msk [vmem:[%s2605_s22 + $0x8] sm:$0xff] %vm1527_vm3, %v1468_v52  ;;  %v1489_v48 = vadd.f32 %v2046_v54, %v1695_v34 }
 0x2b3   : > { %v1480_v55 = vpop.f32.mrf.mxu1 }
 0x2b4   : > { %1534 = vst.msk [vmem:[%s2605_s22 + $0x30] sm:$0xff] %vm1527_vm3, %v1489_v48  ;;  %v1481_v56 = vadd.f32 %v1695_v34, %v1480_v55 }
 0x2b5   : > { %v2047_v18 = vpop.f32.mrf.mxu1 }
 0x2b6   : > { %1532 = vst.msk [vmem:[%s2605_s22 + $0x20] sm:$0xff] %vm1527_vm3, %v1481_v56  ;;  %v1492_v58 = vadd.f32 %v2047_v18, %v1695_v34 }
 0x2b7   : > { %v1483_v59 = vpop.f32.mrf.mxu1 }
 0x2b8   : > { %1535 = vst.msk [vmem:[%s2605_s22 + $0x38] sm:$0xff] %vm1527_vm3, %v1492_v58  ;;  %v1484_v61 = vadd.f32 %v1695_v34, %v1483_v59 }
 0x2b9   : > { %v2050_v53 = vpop.f32.mrf.mxu1 }
 0x2ba   : > { %1533 = vst.msk [vmem:[%s2605_s22 + $0x28] sm:$0xff] %vm1527_vm3, %v1484_v61  ;;  %v1505_v1 = vadd.f32 %v2050_v53, %v1695_v34 }
 0x2bb   : > { %v1496_v4 = vpop.f32.mrf.mxu1 }
 0x2bc   : > { %1538 = vst.msk [vmem:[%s2605_s22 + $0x50] sm:$0xff] %vm1527_vm3, %v1505_v1  ;;  %v1497_v62 = vadd.f32 %v1695_v34, %v1496_v4 }
 0x2bd   : > { %v2051_v27 = vpop.f32.mrf.mxu1 }
 0x2be   : > { %1536 = vst.msk [vmem:[%s2605_s22 + $0x40] sm:$0xff] %vm1527_vm3, %v1497_v62  ;;  %v1508_v0 = vadd.f32 %v2051_v27, %v1695_v34 }
 0x2bf   : > { %v1499_v7 = vpop.f32.mrf.mxu1 }
 0x2c0   : > { %1539 = vst.msk [vmem:[%s2605_s22 + $0x58] sm:$0xff] %vm1527_vm3, %v1508_v0  ;;  %v1500_v11 = vadd.f32 %v1695_v34, %v1499_v7 }
 0x2c1   : > { %v2054_v25 = vpop.f32.mrf.mxu1 }
 0x2c2   : > { %1537 = vst.msk [vmem:[%s2605_s22 + $0x48] sm:$0xff] %vm1527_vm3, %v1500_v11  ;;  %v1521_v12 = vadd.f32 %v2054_v25, %v1695_v34 }
 0x2c3   : > { %v1512_v60 = vpop.f32.mrf.mxu1 }
 0x2c4   : > { %1542 = vst.msk [vmem:[%s2605_s22 + $0x70] sm:$0xff] %vm1527_vm3, %v1521_v12  ;;  %v1513_v2 = vadd.f32 %v1695_v34, %v1512_v60 }
 0x2c5   : > { %v2055_v14 = vpop.f32.mrf.mxu1 }
 0x2c6   : > { %1540 = vst.msk [vmem:[%s2605_s22 + $0x60] sm:$0xff] %vm1527_vm3, %v1513_v2  ;;  %v1524_v15 = vadd.f32 %v2055_v14, %v1695_v34 }
 0x2c7   : > { %v1515_v16 = vpop.f32.mrf.mxu1 }
 0x2c8   : > { %1543 = vst.msk [vmem:[%s2605_s22 + $0x78] sm:$0xff] %vm1527_vm3, %v1524_v15  ;;  %v1516_v17 = vadd.f32 %v1695_v34, %v1515_v16 }
 0x2ca   : > { %1541 = vst.msk [vmem:[%s2605_s22 + $0x68] sm:$0xff] %vm1527_vm3, %v1516_v17 }
 0x2cb PF: > { %s19_s30 = sadd.s32 1, %s2138_s30  }
 0x2cc   : > { %p16_p4 = scmp.ge.s32.totalorder %s19_s30, 6  }
 0x2ce   :  { %18 = sbr.rel (!%p16_p4) target bundleno = 1 (0x1), region = 86 }

// kernel: tpu_custom_call.1
= control target key start
LH: loop header
LB: loop body
LE: loop exit
PB: predicated region body
PF: predicated region fallthrough
CT: control target
= control target key end

     0   :  { %s2190_s30 = smov 0   ;;  %s2642_s0 = inlined_call_operand.vmem [shape: bf16[512,36], index: 0, kind: input, shape index: {}]   ;;  %s2643_s1 = inlined_call_operand.vmem [shape: f32[36,36], index: 1, kind: input, shape index: {}]   ;;  %s2644_s2 = inlined_call_operand.vmem [shape: f32[36,36], index: 2, kind: input, shape index: {}]   ;;  %s2645_s3 = inlined_call_operand.vmem [shape: f32[36,36], index: 3, kind: input, shape index: {}]   ;;  %s2646_s4 = inlined_call_operand.vmem [shape: f32[36,36], index: 4, kind: input, shape index: {}]   ;;  %s2647_s5 = inlined_call_operand.vmem [shape: f32[36,36], index: 5, kind: input, shape index: {}]   ;;  %s2648_s6 = inlined_call_operand.vmem [shape: f32[1,36], index: 6, kind: input, shape index: {}]   ;;  %s2649_s7 = inlined_call_operand.vmem [shape: bf16[36,8], index: 7, kind: input, shape index: {}]   ;;  %s2650_s8 = inlined_call_operand.vmem [shape: f32[1,8], index: 8, kind: input, shape index: {}]   ;;  %s2651_s9 = inlined_call_operand.vmem [shape: f32[512,8], index: 9, kind: output, shape index: {}]  }
   0x1 LB: > { %s1600_s10 = sadd.s32 4294967295, %s2138_s30   ;;  %p1604_p0 = scmp.ge.s32.totalorder %s2138_s30, 1  ;;  %s2138_s30 = sphi %s2190_s30, %s19_s30  }
   0x2   : > { %p288_p1 = scmp.lt.s32.totalorder %s2138_s30, 5 }
   0x4   : > { %p289_p2 = pnand %p1604_p0, %p288_p1 }
   0x5   : > { %s1605_s15 = sshll.u32 (!%p289_p2), %s1600_s10, 4 }
   0x6   : > { %292 = sbr.rel (%p289_p2) target bundleno = 715 (0x2cb), region = 56  ;;  %p325_p3 = scmp.lt.s32.totalorder (!%p289_p2), %s1605_s15, 63 }
   0xb   : > { %v373_v0 = vld [vmem:[%s2643_s1 + $0x20] sm:$0xf]  ;;  %vm423_vm0 = vcmask 1043456   ;;  %v372_v1 = vld [vmem:[%s2643_s1 + $0x18] sm:$0xff]  ;;  %v371_v2 = vld [vmem:[%s2643_s1 + $0x10] sm:$0xff]  ;;  %s2653_s15 = smov (!%p325_p3, %s1605_s15), 63 }
   0xc   : > { %1864 = vmatprep.subr.msk.mxu0 %vm423_vm0, %v373_v0  ;;  %v576_v3 = vld [vmem:[%s2645_s3 + $0x20] sm:$0xf]  ;;  %v575_v4 = vld [vmem:[%s2645_s3 + $0x18] sm:$0xff]  ;;  %v370_v5 = vld [vmem:[%s2643_s1 + $0x8] sm:$0xff]  ;;  %s1606_s26 = sshll.u32 %s2653_s15, 2  ;;  %vm374_vm1 = vcmask 293888  }
   0xd   : > { %1865 = vmatpush3.msk.msra.mxu0 %vm423_vm0, %v373_v0  ;;  %v369_v6 = vld [vmem:[%s2643_s1] sm:$0xff]  ;;  %1898 = vmatprep.subr.msk.mxu1 %vm423_vm0, %v576_v3  ;;  %v574_v7 = vld [vmem:[%s2645_s3 + $0x10] sm:$0xff]  ;;  %s2232_s11 = scalar_lea.vmem %s2642_s0, %s1606_s26  ;;  %v728_v15 = vld [vmem:[%s2646_s4 + $0x18] sm:$0xff]  ;;  %vm1426_vm2 = vcmask 1041408   ;;  %s1608_s17 = sshll.u32 %s2653_s15, 3  ;;  %vm1527_vm3 = vcmask 64512  }
   0xe   : > { %1866 = vmatprep.subr.mxu0 %v372_v1  ;;  %1899 = vmatpush3.msk.msra.mxu1 %vm423_vm0, %v576_v3  ;;  %v1710_v8 = vld [vmem:[%s2232_s11] sm:$0xff]   ;;  %v1741_v9 = vld [vmem:[%s2232_s11 + $0x8] sm:$0xff]   ;;  %v1742_v14 = vld [vmem:[%s2232_s11 + $0x10] sm:$0xff]   ;;  %s2605_s22 = scalar_lea.vmem %s2651_s9, %s1608_s17 }
   0xf   : > { %1867 = vmatpush3.msra.mxu0 %v372_v1  ;;  %1900 = vmatprep.subr.mxu1 %v575_v4  ;;  %v2236_v10 = vunpack.c.l.bf16 %v1710_v8  ;;  %v2238_v11 = vunpack.c.h.bf16 %v1710_v8  ;;  %v729_v12 = vld [vmem:[%s2646_s4 + $0x20] sm:$0xf]  ;;  %v2243_v13 = vunpack.c.l.bf16 %v1741_v9  ;;  %v573_v16 = vld [vmem:[%s2645_s3 + $0x8] sm:$0xff]  ;;  %v2257_v17 = vunpack.c.h.bf16 %v1741_v9  ;;  %v727_v19 = vld [vmem:[%s2646_s4 + $0x10] sm:$0xff] }
  0x10   : > { %1868 = vmatprep.subr.mxu0 %v371_v2  ;;  %1901 = vmatpush3.msra.mxu1 %v575_v4  ;;  %v2262_v18 = vunpack.c.l.bf16 %v1742_v14  ;;  %v1743_v20 = vld [vmem:[%s2232_s11 + $0x18] sm:$0xff]   ;;  %v726_v21 = vld [vmem:[%s2646_s4 + $0x8] sm:$0xff]  ;;  %v572_v22 = vld [vmem:[%s2645_s3] sm:$0xff]  ;;  %v2276_v23 = vunpack.c.h.bf16 %v1742_v14 }
  0x11   : > { %1869 = vmatpush3.msra.mxu0 %v371_v2  ;;  %1902 = vmatprep.subr.mxu1 %v574_v7  ;;  %v2280_v24 = vunpack.c.l.bf16 %v1743_v20  ;;  %v725_v25 = vld [vmem:[%s2646_s4] sm:$0xff]  ;;  %v2288_v27 = vunpack.c.h.bf16 %v1743_v20  ;;  %v1745_v29 = vld [vmem:[%s2232_s11 + $0x28] sm:$0xff]   ;;  %v1746_v32 = vld [vmem:[%s2232_s11 + $0x30] sm:$0xff]  }
  0x12   : > { %1870 = vmatprep.subr.mxu0 %v370_v5  ;;  %1903 = vmatpush3.msra.mxu1 %v574_v7  ;;  %v1744_v26 = vld [vmem:[%s2232_s11 + $0x20] sm:$0xff]   ;;  %v2307_v31 = vunpack.c.l.bf16 %v1745_v29  ;;  %v2314_v33 = vunpack.c.h.bf16 %v1745_v29  ;;  %v2320_v34 = vunpack.c.l.bf16 %v1746_v32  ;;  %v1747_v35 = vld [vmem:[%s2232_s11 + $0x38] sm:$0xff]   ;;  %v2327_v36 = vunpack.c.h.bf16 %v1746_v32  ;;  %v944_v42 = vld [vmem:[%s2647_s5 + $0x10] sm:$0xff] }
  0x13   : > { %1871 = vmatpush3.msra.mxu0 %v370_v5  ;;  %1874 = vmatprep.mubr.msk.f32.mxu0 %vm374_vm1, %v2236_v10  ;;  %v2292_v28 = vunpack.c.l.bf16 %v1744_v26  ;;  %v2301_v30 = vunpack.c.h.bf16 %v1744_v26  ;;  %v2333_v37 = vunpack.c.l.bf16 %v1747_v35  ;;  %v2339_v38 = vunpack.c.h.bf16 %v1747_v35  ;;  %v946_v39 = vld [vmem:[%s2647_s5 + $0x20] sm:$0xf]  ;;  %v945_v40 = vld [vmem:[%s2647_s5 + $0x18] sm:$0xff]  ;;  %v943_v44 = vld [vmem:[%s2647_s5 + $0x8] sm:$0xff] }
  0x14   : > { %1872 = vmatprep.subr.mxu0 %v369_v6  ;;  %1904 = vmatprep.subr.mxu1 %v573_v16  ;;  %v1179_v41 = vld [vmem:[%s2644_s2 + $0x20] sm:$0xf]  ;;  %v1178_v43 = vld [vmem:[%s2644_s2 + $0x18] sm:$0xff]  ;;  %v1177_v46 = vld [vmem:[%s2644_s2 + $0x10] sm:$0xff] }
  0x15   : > { %1873 = vmatpush3.msra.mxu0 %v369_v6  ;;  %1905 = vmatpush3.msra.mxu1 %v573_v16  ;;  %v942_v45 = vld [vmem:[%s2647_s5] sm:$0xff]  ;;  %v1176_v47 = vld [vmem:[%s2644_s2 + $0x8] sm:$0xff]  ;;  %v2065_v49 = vld [vmem:[%s2649_s7 + $0x10] ss:$0 sps:$4 sm:$0x33]  }
  0x16   : > { %1875 = vmatmul.mubr.msk.f32.vlgmr.msra.gmra.mxu0 %vm374_vm1, %v2238_v11  ;;  %1932 = vmatprep.subr.msk.mxu0 %vm423_vm0, %v729_v12  ;;  %v1175_v48 = vld [vmem:[%s2644_s2] sm:$0xff]  ;;  %v2454_v50 = vsel %vm1426_vm2, %v2065_v49, 0 }
  0x17   : > { %1933 = vmatpush3.msk.msra.mxu0 %vm423_vm0, %v729_v12  ;;  %1877 = vmatprep.mubr.msk.f32.mxu0 %vm374_vm1, %v2243_v13 }
  0x18   : > { %1934 = vmatprep.subr.mxu0 %v728_v15  ;;  %1906 = vmatprep.subr.mxu1 %v572_v22 }
  0x19   : > { %1935 = vmatpush3.msra.mxu0 %v728_v15  ;;  %1907 = vmatpush3.msra.mxu1 %v572_v22 }
  0x1a   : > { %1878 = vmatmul.mubr.msk.f32.gmra.mxu0 %vm374_vm1, %v2257_v17  ;;  %1936 = vmatprep.subr.mxu0 %v727_v19 }
  0x1b   : > { %1880 = vmatprep.mubr.msk.f32.mxu0 %vm374_vm1, %v2262_v18  ;;  %1937 = vmatpush3.msra.mxu0 %v727_v19 }
  0x1c   : > { %1938 = vmatprep.subr.mxu0 %v726_v21  ;;  %1908 = vmatprep.mubr.msk.f32.mxu1 %vm374_vm1, %v2236_v10 }
  0x1d   : > { %1939 = vmatpush3.msra.mxu0 %v726_v21  ;;  %1909 = vmatmul.mubr.msk.f32.vlgmr.msra.gmra.mxu1 %vm374_vm1, %v2238_v11 }
  0x1e   : > { %1881 = vmatmul.mubr.msk.f32.gmra.mxu0 %vm374_vm1, %v2276_v23  ;;  %1940 = vmatprep.subr.mxu0 %v725_v25 }
  0x1f   : > { %1883 = vmatprep.mubr.msk.f32.mxu0 %vm374_vm1, %v2280_v24  ;;  %1941 = vmatpush3.msra.mxu0 %v725_v25 }
  0x20   : > { %1911 = vmatprep.mubr.msk.f32.mxu1 %vm374_vm1, %v2243_v13  ;;  %1966 = vmatprep.subr.msk.mxu1 %vm423_vm0, %v946_v39 }
  0x21   : > { %1912 = vmatmul.mubr.msk.f32.gmra.mxu1 %vm374_vm1, %v2257_v17  ;;  %2000 = vmatprep.subr.msk.mxu0 %vm423_vm0, %v1179_v41 }
  0x22   : > { %1884 = vmatmul.mubr.msk.f32.gmra.mxu0 %vm374_vm1, %v2288_v27  ;;  %1914 = vmatprep.mubr.msk.f32.mxu1 %vm374_vm1, %v2262_v18 }
  0x23   : > { %1886 = vmatprep.mubr.msk.f32.mxu0 %vm374_vm1, %v2292_v28  ;;  %1967 = vmatpush3.msk.msra.mxu1 %vm423_vm0, %v946_v39 }
  0x24   : > { %1968 = vmatprep.subr.mxu1 %v945_v40 }
  0x25   : > { %1915 = vmatmul.mubr.msk.f32.gmra.mxu1 %vm374_vm1, %v2276_v23 }
  0x26   : > { %1887 = vmatmul.mubr.msk.f32.gmra.mxu0 %vm374_vm1, %v2301_v30  ;;  %1917 = vmatprep.mubr.msk.f32.mxu1 %vm374_vm1, %v2280_v24 }
  0x27   : > { %1889 = vmatprep.mubr.msk.f32.mxu0 %vm374_vm1, %v2307_v31  ;;  %1969 = vmatpush3.msra.mxu1 %v945_v40 }
  0x28   : > { %1970 = vmatprep.subr.mxu1 %v944_v42 }
  0x29   : > { %1918 = vmatmul.mubr.msk.f32.gmra.mxu1 %vm374_vm1, %v2288_v27 }
  0x2a   : > { %1890 = vmatmul.mubr.msk.f32.gmra.mxu0 %vm374_vm1, %v2314_v33  ;;  %1920 = vmatprep.mubr.msk.f32.mxu1 %vm374_vm1, %v2292_v28 }
  0x2b   : > { %1892 = vmatprep.mubr.msk.f32.mxu0 %vm374_vm1, %v2320_v34  ;;  %1971 = vmatpush3.msra.mxu1 %v944_v42 }
  0x2c   : > { %1972 = vmatprep.subr.mxu1 %v943_v44 }
  0x2d   : > { %1921 = vmatmul.mubr.msk.f32.gmra.mxu1 %vm374_vm1, %v2301_v30 }
  0x2e   : > { %1893 = vmatmul.mubr.msk.f32.gmra.mxu0 %vm374_vm1, %v2327_v36  ;;  %1923 = vmatprep.mubr.msk.f32.mxu1 %vm374_vm1, %v2307_v31 }
  0x2f   : > { %1895 = vmatprep.mubr.msk.f32.mxu0 %vm374_vm1, %v2333_v37  ;;  %1973 = vmatpush3.msra.mxu1 %v943_v44 }
  0x30   : > { %1974 = vmatprep.subr.mxu1 %v942_v45 }
  0x31   : > { %1924 = vmatmul.mubr.msk.f32.gmra.mxu1 %vm374_vm1, %v2314_v33 }
  0x32   : > { %1896 = vmatmul.mubr.msk.f32.gmra.mxu0 %vm374_vm1, %v2339_v38  ;;  %1926 = vmatprep.mubr.msk.f32.mxu1 %vm374_vm1, %v2320_v34 }
  0x33   : > { %1942 = vmatprep.mubr.msk.f32.mxu0 %vm374_vm1, %v2236_v10  ;;  %1975 = vmatpush3.msra.mxu1 %v942_v45 }
  0x34   : > { %2056 = vmatprep.subr.msk.bf16.mxu1 %vm1426_vm2, %v2065_v49 }
  0x35   : > { %1927 = vmatmul.mubr.msk.f32.gmra.mxu1 %vm374_vm1, %v2327_v36 }
  0x36   : > { %1943 = vmatmul.mubr.msk.f32.vlgmr.msra.gmra.mxu0 %vm374_vm1, %v2238_v11  ;;  %1929 = vmatprep.mubr.msk.f32.mxu1 %vm374_vm1, %v2333_v37 }
  0x37   : > { %1945 = vmatprep.mubr.msk.f32.mxu0 %vm374_vm1, %v2243_v13  ;;  %2001 = vmatpush3.msk.msra.mxu0 %vm423_vm0, %v1179_v41 }
  0x38   : > { %2002 = vmatprep.subr.mxu0 %v1178_v43 }
  0x39   : > { %1930 = vmatmul.mubr.msk.f32.gmra.mxu1 %vm374_vm1, %v2339_v38  ;;  %2003 = vmatpush3.msra.mxu0 %v1178_v43 }
  0x3a   : > { %1946 = vmatmul.mubr.msk.f32.gmra.mxu0 %vm374_vm1, %v2257_v17  ;;  %2004 = vmatprep.subr.mxu0 %v1177_v46 }
  0x3b   : > { %1948 = vmatprep.mubr.msk.f32.mxu0 %vm374_vm1, %v2262_v18  ;;  %2005 = vmatpush3.msra.mxu0 %v1177_v46 }
  0x3c   : > { %2006 = vmatprep.subr.mxu0 %v1176_v47 }
  0x3d   : > { %2007 = vmatpush3.msra.mxu0 %v1176_v47 }
  0x3e   : > { %1949 = vmatmul.mubr.msk.f32.gmra.mxu0 %vm374_vm1, %v2276_v23  ;;  %2008 = vmatprep.subr.mxu0 %v1175_v48 }
  0x3f   : > { %1951 = vmatprep.mubr.msk.f32.mxu0 %vm374_vm1, %v2280_v24  ;;  %2009 = vmatpush3.msra.mxu0 %v1175_v48 }
  0x42   : > { %1952 = vmatmul.mubr.msk.f32.gmra.mxu0 %vm374_vm1, %v2288_v27 }
  0x43   : > { %1954 = vmatprep.mubr.msk.f32.mxu0 %vm374_vm1, %v2292_v28 }
  0x46   : > { %1955 = vmatmul.mubr.msk.f32.gmra.mxu0 %vm374_vm1, %v2301_v30 }
  0x47   : > { %1957 = vmatprep.mubr.msk.f32.mxu0 %vm374_vm1, %v2307_v31 }
  0x4a   : > { %1958 = vmatmul.mubr.msk.f32.gmra.mxu0 %vm374_vm1, %v2314_v33 }
  0x4b   : > { %1960 = vmatprep.mubr.msk.f32.mxu0 %vm374_vm1, %v2320_v34 }
  0x4e   : > { %1961 = vmatmul.mubr.msk.f32.gmra.mxu0 %vm374_vm1, %v2327_v36 }
  0x4f   : > { %1963 = vmatprep.mubr.msk.f32.mxu0 %vm374_vm1, %v2333_v37 }
  0x52   : > { %1964 = vmatmul.mubr.msk.f32.gmra.mxu0 %vm374_vm1, %v2339_v38 }
  0x53   : > { %2010 = vmatprep.mubr.msk.f32.mxu0 %vm374_vm1, %v2236_v10 }
  0x56   : > { %2011 = vmatmul.mubr.msk.f32.vlgmr.msra.gmra.mxu0 %vm374_vm1, %v2238_v11 }
  0x57   : > { %2013 = vmatprep.mubr.msk.f32.mxu0 %vm374_vm1, %v2243_v13 }
  0x5a   : > { %2014 = vmatmul.mubr.msk.f32.gmra.mxu0 %vm374_vm1, %v2257_v17 }
  0x5b   : > { %2016 = vmatprep.mubr.msk.f32.mxu0 %vm374_vm1, %v2262_v18 }
  0x5e   : > { %2017 = vmatmul.mubr.msk.f32.gmra.mxu0 %vm374_vm1, %v2276_v23 }
  0x5f   : > { %2019 = vmatprep.mubr.msk.f32.mxu0 %vm374_vm1, %v2280_v24 }
  0x62   : > { %2020 = vmatmul.mubr.msk.f32.gmra.mxu0 %vm374_vm1, %v2288_v27 }
  0x63   : > { %2022 = vmatprep.mubr.msk.f32.mxu0 %vm374_vm1, %v2292_v28 }
  0x66   : > { %2023 = vmatmul.mubr.msk.f32.gmra.mxu0 %vm374_vm1, %v2301_v30 }
  0x67   : > { %2025 = vmatprep.mubr.msk.f32.mxu0 %vm374_vm1, %v2307_v31 }
  0x6a   : > { %2026 = vmatmul.mubr.msk.f32.gmra.mxu0 %vm374_vm1, %v2314_v33 }
  0x6b   : > { %2028 = vmatprep.mubr.msk.f32.mxu0 %vm374_vm1, %v2320_v34 }
  0x6e   : > { %2029 = vmatmul.mubr.msk.f32.gmra.mxu0 %vm374_vm1, %v2327_v36 }
  0x6f   : > { %2031 = vmatprep.mubr.msk.f32.mxu0 %vm374_vm1, %v2333_v37 }
  0x72   : > { %2032 = vmatmul.mubr.msk.f32.gmra.mxu0 %vm374_vm1, %v2339_v38 }
  0xd6   : > { %v1876_v51 = vpop.f32.mrf.mxu0 }
  0xd8   : > { %v493_v52 = vpop.f32.mrf.mxu0 }
  0xda   : > { %v1879_v53 = vpop.f32.mrf.mxu0 }
  0xdc   : > { %v503_v54 = vpop.f32.mrf.mxu0 }
  0xdd   : > { %v1910_v57 = vpop.f32.mrf.mxu1 }
  0xde   : > { %v1882_v55 = vpop.f32.mrf.mxu0 }
  0xdf   : > { %v646_v59 = vpop.f32.mrf.mxu1 }
  0xe0   : > { %v513_v56 = vpop.f32.mrf.mxu0 }
  0xe1   : > { %v1913_v61 = vpop.f32.mrf.mxu1 }
  0xe2   : > { %v1885_v58 = vpop.f32.mrf.mxu0 }
  0xe3   : > { %v656_v63 = vpop.f32.mrf.mxu1 }
  0xe4   : > { %v523_v60 = vpop.f32.mrf.mxu0 }
  0xe5   : > { %v1916_v1 = vpop.f32.mrf.mxu1 }
  0xe6   : > { %v1888_v62 = vpop.f32.mrf.mxu0 }
  0xe7   : > { %v666_v4 = vpop.f32.mrf.mxu1 }
  0xe8   : > { %v533_v0 = vpop.f32.mrf.mxu0 }
  0xe9   : > { %v1919_v7 = vpop.f32.mrf.mxu1 }
  0xea   : > { %v2464_v2 = vpop.f32.mrf.mxu0 }
  0xeb   : > { %v676_v10 = vpop.f32.mrf.mxu1 }
  0xec   : > { %v2466_v3 = vpop.f32.mrf.mxu0 }
  0xed   : > { %v1922_v14 = vpop.f32.mrf.mxu1 }
  0xee   : > { %v2468_v5 = vpop.f32.mrf.mxu0 }
  0xef   : > { %v686_v22 = vpop.f32.mrf.mxu1 }
  0xf0   : > { %v2470_v6 = vpop.f32.mrf.mxu0 }
  0xf1   : > { %v1925_v31 = vpop.f32.mrf.mxu1 }
  0xf2   : > { %v2472_v8 = vpop.f32.mrf.mxu0 }
  0xf3   : > { %v696_v40 = vpop.f32.mrf.mxu1 }
  0xf4   : > { %v2474_v9 = vpop.f32.mrf.mxu0 }
  0xf5   : > { %v1928_v49 = vpop.f32.mrf.mxu1 }
  0xf6   : > { %v1944_v11 = vpop.f32.mrf.mxu0 }
  0xf7   : > { %v879_v12 = vmax.f32 %v1910_v57, %v1944_v11 }
  0xf8   : > { %v799_v13 = vpop.f32.mrf.mxu0 }
  0xf9   : > { %v895_v15 = vsub.f32 %v1876_v51, %v879_v12  ;;  %v878_v16 = vmax.f32 %v646_v59, %v799_v13 }
  0xfa   : > { %v1947_v17 = vpop.f32.mrf.mxu0 }
  0xfb   : > { %v894_v18 = vsub.f32 %v493_v52, %v878_v16  ;;  %v881_v19 = vmax.f32 %v1913_v61, %v1947_v17  ;;  %v912_v20 = vmul.f32 1.442695, %v895_v15  ;;  %v706_v61 = vpop.f32.mrf.mxu1 }
  0xfc   : > { %v809_v21 = vpop.f32.mrf.mxu0 }
  0xfd   : > { %v910_v23 = vmul.f32 1.442695, %v894_v18  ;;  %v897_v24 = vsub.f32 %v1879_v53, %v881_v19  ;;  %v880_v25 = vmax.f32 %v656_v63, %v809_v21 }
  0xfe   : > { %v1950_v26 = vpop.f32.mrf.mxu0 }
  0xff   : > { %2068 = vpow2.f32 %v910_v23  ;;  %v896_v27 = vsub.f32 %v503_v54, %v880_v25  ;;  %v883_v28 = vmax.f32 %v1916_v1, %v1950_v26  ;;  %v916_v29 = vmul.f32 1.442695, %v897_v24 }
 0x100   : > { %2070 = vpow2.f32 %v912_v20  ;;  %v819_v30 = vpop.f32.mrf.mxu0 }
 0x101   : > { %v914_v32 = vmul.f32 1.442695, %v896_v27  ;;  %v899_v33 = vsub.f32 %v1882_v55, %v883_v28  ;;  %v882_v34 = vmax.f32 %v666_v4, %v819_v30 }
 0x102   : > { %v1953_v35 = vpop.f32.mrf.mxu0 }
 0x103   : > { %2072 = vpow2.f32 %v914_v32  ;;  %v898_v36 = vsub.f32 %v513_v56, %v882_v34  ;;  %v885_v37 = vmax.f32 %v1919_v7, %v1953_v35  ;;  %v920_v38 = vmul.f32 1.442695, %v899_v33  ;;  %v2066_v35 = vld [vmem:[%s2649_s7 + $0x8] sm:$0xff]  }
 0x104   : > { %2074 = vpow2.f32 %v916_v29  ;;  %v829_v39 = vpop.f32.mrf.mxu0 }
 0x105   : > { %v918_v41 = vmul.f32 1.442695, %v898_v36  ;;  %v901_v42 = vsub.f32 %v1885_v58, %v885_v37  ;;  %v884_v43 = vmax.f32 %v676_v10, %v829_v39  ;;  %v2067_v36 = vld [vmem:[%s2649_s7] sm:$0xff]  }
 0x106   : > { %v1956_v44 = vpop.f32.mrf.mxu0 }
 0x107   : > { %2076 = vpow2.f32 %v918_v41  ;;  %v900_v45 = vsub.f32 %v523_v60, %v884_v43  ;;  %v887_v46 = vmax.f32 %v1922_v14, %v1956_v44  ;;  %v924_v47 = vmul.f32 1.442695, %v901_v42 }
 0x108   : > { %2078 = vpow2.f32 %v920_v38  ;;  %v839_v48 = vpop.f32.mrf.mxu0 }
 0x109   : > { %v922_v51 = vmul.f32 1.442695, %v900_v45  ;;  %v903_v52 = vsub.f32 %v1888_v62, %v887_v46  ;;  %v886_v53 = vmax.f32 %v686_v22, %v839_v48 }
 0x10a   : > { %v1959_v54 = vpop.f32.mrf.mxu0 }
 0x10b   : > { %2080 = vpow2.f32 %v922_v51  ;;  %v902_v55 = vsub.f32 %v533_v0, %v886_v53  ;;  %v889_v56 = vmax.f32 %v1925_v31, %v1959_v54  ;;  %v928_v58 = vmul.f32 1.442695, %v903_v52  ;;  %v2556_v51 = vld [vmem:[%s2648_s6] ss:$0 sm:$0xff] }
 0x10c   : > { %v2476_v57 = vpop.eup %2068  ;;  %2082 = vpow2.f32 %v924_v47  ;;  %v849_v59 = vpop.f32.mrf.mxu0 }
 0x10d   : > { %v2478_v63 = vpop.eup %2070  ;;  %v926_v60 = vmul.f32 1.442695, %v902_v55  ;;  %v905_v1 = vsub.f32 %v2464_v2, %v889_v56  ;;  %v888_v4 = vmax.f32 %v696_v40, %v849_v59  ;;  %1976 = vmatprep.mubr.msk.f32.mxu1 %vm374_vm1, %v2476_v57  ;;  %v1931_v2 = vpop.f32.mrf.mxu1 }
 0x10e   : > { %v1962_v62 = vpop.f32.mrf.mxu0  ;;  %1977 = vmatmul.mubr.msk.f32.vlgmr.msra.gmra.mxu1 %vm374_vm1, %v2478_v63 }
 0x10f   : > { %2084 = vpow2.f32 %v926_v60  ;;  %v904_v0 = vsub.f32 %v2466_v3, %v888_v4  ;;  %v891_v7 = vmax.f32 %v1928_v49, %v1962_v62  ;;  %2035 = vmatpush3.bf16.msra.mxu1 %v2454_v50  ;;  %v932_v11 = vmul.f32 1.442695, %v905_v1  ;;  %v716_v20 = vpop.f32.mrf.mxu1 }
 0x110   : > { %v2487_v10 = vpop.eup %2072  ;;  %2086 = vpow2.f32 %v928_v58  ;;  %v859_v12 = vpop.f32.mrf.mxu0  ;;  %2036 = vmatprep.subr.bf16.mxu1 %v2066_v35 }
 0x111   : > { %v2489_v13 = vpop.eup %2074  ;;  %v930_v14 = vmul.f32 1.442695, %v904_v0  ;;  %v907_v15 = vsub.f32 %v2468_v5, %v891_v7  ;;  %v890_v16 = vmax.f32 %v706_v61, %v859_v12  ;;  %1979 = vmatprep.mubr.msk.f32.mxu1 %vm374_vm1, %v2487_v10 }
 0x112   : > { %v1965_v17 = vpop.f32.mrf.mxu0  ;;  %1980 = vmatmul.mubr.msk.f32.gmra.mxu1 %vm374_vm1, %v2489_v13 }
 0x113   : > { %2088 = vpow2.f32 %v930_v14  ;;  %v906_v50 = vsub.f32 %v2470_v6, %v890_v16  ;;  %v893_v3 = vmax.f32 %v1931_v2, %v1965_v17  ;;  %v936_v19 = vmul.f32 1.442695, %v907_v15  ;;  %2037 = vmatpush3.bf16.msra.mxu1 %v2066_v35 }
 0x114   : > { %v2497_v18 = vpop.eup %2076  ;;  %2090 = vpow2.f32 %v932_v11  ;;  %v869_v21 = vpop.f32.mrf.mxu0  ;;  %2038 = vmatprep.subr.bf16.mxu1 %v2067_v36 }
 0x115   : > { %v2499_v22 = vpop.eup %2078  ;;  %v934_v5 = vmul.f32 1.442695, %v906_v50  ;;  %v909_v23 = vsub.f32 %v2472_v8, %v893_v3  ;;  %v892_v24 = vmax.f32 %v716_v20, %v869_v21  ;;  %1982 = vmatprep.mubr.msk.f32.mxu1 %vm374_vm1, %v2497_v18 }
 0x116   : > { %1983 = vmatmul.mubr.msk.f32.gmra.mxu1 %vm374_vm1, %v2499_v22  ;;  %v2012_v37 = vpop.f32.mrf.mxu0 }
 0x117   : > { %2092 = vpow2.f32 %v934_v5  ;;  %v908_v6 = vsub.f32 %v2474_v9, %v892_v24  ;;  %v940_v26 = vmul.f32 1.442695, %v909_v23  ;;  %2039 = vmatpush3.bf16.msra.mxu1 %v2067_v36  ;;  %v1262_v54 = vadd.f32 %v2012_v37, %v2556_v51 }
 0x118   : > { %v2507_v25 = vpop.eup %2080  ;;  %2094 = vpow2.f32 %v936_v19  ;;  %v1256_v38 = vpop.f32.mrf.mxu0 }
 0x119   : > { %v2509_v27 = vpop.eup %2082  ;;  %v938_v28 = vmul.f32 1.442695, %v908_v6  ;;  %1985 = vmatprep.mubr.msk.f32.mxu1 %vm374_vm1, %v2507_v25  ;;  %v1257_v56 = vadd.f32 %v2556_v51, %v1256_v38  ;;  %v1336_v4 = vmax.f32 %v1262_v54, 0.0 }
 0x11a   : > { %1986 = vmatmul.mubr.msk.f32.gmra.mxu1 %vm374_vm1, %v2509_v27  ;;  %v2015_v39 = vpop.f32.mrf.mxu0 }
 0x11b   : > { %2096 = vpow2.f32 %v938_v28  ;;  %v1272_v61 = vadd.f32 %v2015_v39, %v2556_v51  ;;  %v1335_v12 = vmax.f32 %v1257_v56, 0.0 }
 0x11c   : > { %v2515_v8 = vpop.eup %2084  ;;  %2098 = vpow2.f32 %v940_v26  ;;  %v1266_v40 = vpop.f32.mrf.mxu0 }
 0x11d   : > { %v2517_v29 = vpop.eup %2086  ;;  %1988 = vmatprep.mubr.msk.f32.mxu1 %vm374_vm1, %v2515_v8  ;;  %v1267_v7 = vadd.f32 %v2556_v51, %v1266_v40  ;;  %v1338_v14 = vmax.f32 %v1272_v61, 0.0 }
 0x11e   : > { %1989 = vmatmul.mubr.msk.f32.gmra.mxu1 %vm374_vm1, %v2517_v29  ;;  %v2018_v41 = vpop.f32.mrf.mxu0 }
 0x11f   : > { %v1282_v16 = vadd.f32 %v2018_v41, %v2556_v51  ;;  %v1337_v20 = vmax.f32 %v1267_v7, 0.0 }
 0x120   : > { %v2523_v9 = vpop.eup %2088  ;;  %v1276_v42 = vpop.f32.mrf.mxu0 }
 0x121   : > { %v2525_v30 = vpop.eup %2090  ;;  %1991 = vmatprep.mubr.msk.f32.mxu1 %vm374_vm1, %v2523_v9  ;;  %v1340_v6 = vmax.f32 %v1282_v16, 0.0 }
 0x122   : > { %1992 = vmatmul.mubr.msk.f32.gmra.mxu1 %vm374_vm1, %v2525_v30  ;;  %v2021_v45 = vpop.f32.mrf.mxu0 }
 0x123   : > { %v1292_v28 = vadd.f32 %v2021_v45, %v2556_v51 }
 0x124   : > { %v2531_v31 = vpop.eup %2092  ;;  %v1286_v48 = vpop.f32.mrf.mxu0 }
 0x125   : > { %v2533_v32 = vpop.eup %2094  ;;  %1994 = vmatprep.mubr.msk.f32.mxu1 %vm374_vm1, %v2531_v31 }
 0x126   : > { %1995 = vmatmul.mubr.msk.f32.gmra.mxu1 %vm374_vm1, %v2533_v32  ;;  %v2024_v53 = vpop.f32.mrf.mxu0 }
 0x128   : > { %v2539_v33 = vpop.eup %2096  ;;  %v1296_v60 = vpop.f32.mrf.mxu0 }
 0x129   : > { %v2541_v34 = vpop.eup %2098  ;;  %1997 = vmatprep.mubr.msk.f32.mxu1 %vm374_vm1, %v2539_v33 }
 0x12a   : > { %1998 = vmatmul.mubr.msk.f32.gmra.mxu1 %vm374_vm1, %v2541_v34  ;;  %v2027_v17 = vpop.f32.mrf.mxu0 }
 0x12c   : > { %v1306_v35 = vpop.f32.mrf.mxu0 }
 0x1ce   : > { %v1978_v43 = vpop.f32.mrf.mxu1 }
 0x1cf   : > { %2100 = vrcp.f32 %v1978_v43 }
 0x1d0   : > { %v1064_v44 = vpop.f32.mrf.mxu1 }
 0x1d1   : > { %2102 = vrcp.f32 %v1064_v44  ;;  %v1342_v44 = vmax.f32 %v1292_v28, 0.0 }
 0x1d2   : > { %v1981_v46 = vpop.f32.mrf.mxu1 }
 0x1d3   : > { %2104 = vrcp.f32 %v1981_v46  ;;  %v1302_v46 = vadd.f32 %v2024_v53, %v2556_v51 }
 0x1d4   : > { %v1074_v47 = vpop.f32.mrf.mxu1 }
 0x1d5   : > { %2106 = vrcp.f32 %v1074_v47  ;;  %v2030_v47 = vpop.f32.mrf.mxu0  ;;  %v1344_v61 = vmax.f32 %v1302_v46, 0.0 }
 0x1d6   : > { %v1984_v49 = vpop.f32.mrf.mxu1 }
 0x1d7   : > { %2108 = vrcp.f32 %v1984_v49 }
 0x1d8   : > { %v1084_v52 = vpop.f32.mrf.mxu1 }
 0x1d9   : > { %2110 = vrcp.f32 %v1084_v52 }
 0x1da   : > { %v1987_v55 = vpop.f32.mrf.mxu1 }
 0x1db   : > { %2112 = vrcp.f32 %v1987_v55 }
 0x1dc   : > { %v2101_v58 = vpop.eup %2100  ;;  %v1094_v59 = vpop.f32.mrf.mxu1 }
 0x1dd   : > { %v1160_v1 = vmul.f32 %v2101_v58, %v2478_v63  ;;  %2114 = vrcp.f32 %v1094_v59  ;;  %v1297_v58 = vadd.f32 %v2556_v51, %v1296_v60  ;;  %v1307_v60 = vadd.f32 %v2556_v51, %v1306_v35 }
 0x1de   : > { %v2103_v62 = vpop.eup %2102  ;;  %v1990_v0 = vpop.f32.mrf.mxu1 }
 0x1df   : > { %v1159_v11 = vmul.f32 %v2103_v62, %v2476_v57  ;;  %2116 = vrcp.f32 %v1990_v0  ;;  %v1352_v50 = vmul.f32 %v1336_v4, %v1160_v1  ;;  %v1277_v57 = vadd.f32 %v2556_v51, %v1276_v42  ;;  %v1316_v4 = vpop.f32.mrf.mxu0 }
 0x1e0   : > { %v2105_v2 = vpop.eup %2104  ;;  %v1104_v15 = vpop.f32.mrf.mxu1  ;;  %v1312_v1 = vadd.f32 %v2027_v17, %v2556_v51 }
 0x1e1   : > { %v1351_v3 = vmul.f32 %v1335_v12, %v1159_v11  ;;  %v1162_v63 = vmul.f32 %v2105_v2, %v2489_v13  ;;  %2118 = vrcp.f32 %v1104_v15  ;;  %v1339_v42 = vmax.f32 %v1277_v57, 0.0  ;;  %v2033_v15 = vpop.f32.mrf.mxu0 }
 0x1e2   : > { %v2107_v19 = vpop.eup %2106  ;;  %v1993_v21 = vpop.f32.mrf.mxu1  ;;  %v1343_v12 = vmax.f32 %v1297_v58, 0.0 }
 0x1e3   : > { %v1367_v5 = vpack.c.bf16 %v1352_v50, %v1351_v3  ;;  %v1161_v23 = vmul.f32 %v2107_v19, %v2487_v10  ;;  %2120 = vrcp.f32 %v1993_v21  ;;  %v1354_v36 = vmul.f32 %v1338_v14, %v1162_v63 }
 0x1e4   : > { %v2109_v24 = vpop.eup %2108  ;;  %v1114_v26 = vpop.f32.mrf.mxu1  ;;  %v1287_v10 = vadd.f32 %v2556_v51, %v1286_v48  ;;  %v1322_v14 = vadd.f32 %v2030_v47, %v2556_v51  ;;  %v1346_v3 = vmax.f32 %v1312_v1, 0.0 }
 0x1e5   : > { %v1353_v37 = vmul.f32 %v1337_v20, %v1161_v23  ;;  %v1164_v13 = vmul.f32 %v2109_v24, %v2499_v22  ;;  %2122 = vrcp.f32 %v1114_v26  ;;  %2040 = vmatprep.mubr.msk.bf16.mxu1 %vm374_vm1, %v1367_v5  ;;  %v1345_v20 = vmax.f32 %v1307_v60, 0.0  ;;  %v1326_v23 = vpop.f32.mrf.mxu0 }
 0x1e6   : > { %v2111_v38 = vpop.eup %2110  ;;  %v1996_v39 = vpop.f32.mrf.mxu1  ;;  %v1341_v48 = vmax.f32 %v1287_v10, 0.0  ;;  %v1348_v5 = vmax.f32 %v1322_v14, 0.0  ;;  %v1332_v26 = vadd.f32 %v2033_v15, %v2556_v51 }
 0x1e7   : > { %v1368_v40 = vpack.c.bf16 %v1354_v36, %v1353_v37  ;;  %v1163_v41 = vmul.f32 %v2111_v38, %v2497_v18  ;;  %2124 = vrcp.f32 %v1996_v39  ;;  %v1356_v49 = vmul.f32 %v1340_v6, %v1164_v13 }
 0x1e8   : > { %v2113_v43 = vpop.eup %2112  ;;  %v1124_v45 = vpop.f32.mrf.mxu1  ;;  %v1350_v10 = vmax.f32 %v1332_v26, 0.0 }
 0x1e9   : > { %v1355_v22 = vmul.f32 %v1339_v42, %v1163_v41  ;;  %v1166_v52 = vmul.f32 %v2113_v43, %v2509_v27  ;;  %2126 = vrcp.f32 %v1124_v45  ;;  %2041 = vmatmul.mubr.msk.bf16.vlgmr.msra.gmra.mxu1 %vm374_vm1, %v1368_v40 }
 0x1ea   : > { %v2115_v54 = vpop.eup %2114  ;;  %v1999_v55 = vpop.f32.mrf.mxu1 }
 0x1eb   : > { %v1369_v56 = vpack.c.bf16 %v1356_v49, %v1355_v22  ;;  %v1165_v18 = vmul.f32 %v2115_v54, %v2507_v25  ;;  %2128 = vrcp.f32 %v1999_v55  ;;  %v1358_v62 = vmul.f32 %v1342_v44, %v1166_v52 }
 0x1ec   : > { %v2117_v59 = vpop.eup %2116  ;;  %v1134_v53 = vpop.f32.mrf.mxu1 }
 0x1ed   : > { %v1357_v27 = vmul.f32 %v1341_v48, %v1165_v18  ;;  %v1168_v0 = vmul.f32 %v2117_v59, %v2517_v29  ;;  %2130 = vrcp.f32 %v1134_v53  ;;  %2044 = vmatprep.mubr.msk.bf16.mxu1 %vm374_vm1, %v1369_v56 }
 0x1ee   : > { %v2119_v7 = vpop.eup %2118 }
 0x1ef   : > { %v1370_v11 = vpack.c.bf16 %v1358_v62, %v1357_v27  ;;  %v1167_v25 = vmul.f32 %v2119_v7, %v2515_v8  ;;  %v1360_v16 = vmul.f32 %v1344_v61, %v1168_v0  ;;  %v1317_v8 = vadd.f32 %v2556_v51, %v1316_v4 }
 0x1f0   : > { %v2121_v2 = vpop.eup %2120 }
 0x1f1   : > { %v1359_v17 = vmul.f32 %v1343_v12, %v1167_v25  ;;  %v1170_v50 = vmul.f32 %v2121_v2, %v2525_v30  ;;  %2045 = vmatmul.mubr.msk.bf16.gmra.mxu1 %vm374_vm1, %v1370_v11  ;;  %v1347_v36 = vmax.f32 %v1317_v8, 0.0 }
 0x1f2   : > { %v2123_v29 = vpop.eup %2122 }
 0x1f3   : > { %v1371_v63 = vpack.c.bf16 %v1360_v16, %v1359_v17  ;;  %v1169_v19 = vmul.f32 %v2123_v29, %v2523_v9  ;;  %v1362_v57 = vmul.f32 %v1346_v3, %v1170_v50  ;;  %v1327_v9 = vadd.f32 %v2556_v51, %v1326_v23 }
 0x1f4   : > { %v2125_v21 = vpop.eup %2124 }
 0x1f5   : > { %v1361_v24 = vmul.f32 %v1345_v20, %v1169_v19  ;;  %v1172_v6 = vmul.f32 %v2125_v21, %v2533_v32  ;;  %2048 = vmatprep.mubr.msk.bf16.mxu1 %vm374_vm1, %v1371_v63  ;;  %v1349_v42 = vmax.f32 %v1327_v9, 0.0 }
 0x1f6   : > { %v2127_v30 = vpop.eup %2126 }
 0x1f7   : > { %v1372_v28 = vpack.c.bf16 %v1362_v57, %v1361_v24  ;;  %v1171_v35 = vmul.f32 %v2127_v30, %v2531_v31  ;;  %v1364_v13 = vmul.f32 %v1348_v5, %v1172_v6 }
 0x1f8   : > { %v2129_v37 = vpop.eup %2128 }
 0x1f9   : > { %v1363_v38 = vmul.f32 %v1347_v36, %v1171_v35  ;;  %v1174_v39 = vmul.f32 %v2129_v37, %v2541_v34  ;;  %2049 = vmatmul.mubr.msk.bf16.gmra.mxu1 %vm374_vm1, %v1372_v28  ;;  %v1695_v34 = vld [vmem:[%s2650_s8] ss:$0 sm:$0xff] }
 0x1fa   : > { %v2131_v32 = vpop.eup %2130 }
 0x1fb   : > { %v1373_v40 = vpack.c.bf16 %v1364_v13, %v1363_v38  ;;  %v1173_v41 = vmul.f32 %v2131_v32, %v2539_v33  ;;  %v1366_v43 = vmul.f32 %v1350_v10, %v1174_v39 }
 0x1fd   : > { %v1365_v44 = vmul.f32 %v1349_v42, %v1173_v41  ;;  %2052 = vmatprep.mubr.msk.bf16.mxu1 %vm374_vm1, %v1373_v40 }
 0x1ff   : > { %v1374_v31 = vpack.c.bf16 %v1366_v43, %v1365_v44 }
 0x201   : > { %2053 = vmatmul.mubr.msk.bf16.gmra.mxu1 %vm374_vm1, %v1374_v31 }
 0x2a9   : > { %v2042_v33 = vpop.f32.mrf.mxu1 }
 0x2aa   : > { %v1473_v51 = vadd.f32 %v2042_v33, %v1695_v34 }
 0x2ab   : > { %v1464_v45 = vpop.f32.mrf.mxu1 }
 0x2ac   : > { %1530 = vst.msk [vmem:[%s2605_s22 + $0x10] sm:$0xff] %vm1527_vm3, %v1473_v51  ;;  %v1465_v46 = vadd.f32 %v1695_v34, %v1464_v45 }
 0x2ad   : > { %v2043_v47 = vpop.f32.mrf.mxu1 }
 0x2ae   : > { %1528 = vst.msk [vmem:[%s2605_s22] sm:$0xff] %vm1527_vm3, %v1465_v46  ;;  %v1476_v49 = vadd.f32 %v2043_v47, %v1695_v34 }
 0x2af   : > { %v1467_v22 = vpop.f32.mrf.mxu1 }
 0x2b0   : > { %1531 = vst.msk [vmem:[%s2605_s22 + $0x18] sm:$0xff] %vm1527_vm3, %v1476_v49  ;;  %v1468_v52 = vadd.f32 %v1695_v34, %v1467_v22 }
 0x2b1   : > { %v2046_v54 = vpop.f32.mrf.mxu1 }
 0x2b2   : > { %1529 = vst.msk [vmem:[%s2605_s22 + $0x8] sm:$0xff] %vm1527_vm3, %v1468_v52  ;;  %v1489_v48 = vadd.f32 %v2046_v54, %v1695_v34 }
 0x2b3   : > { %v1480_v55 = vpop.f32.mrf.mxu1 }
 0x2b4   : > { %1534 = vst.msk [vmem:[%s2605_s22 + $0x30] sm:$0xff] %vm1527_vm3, %v1489_v48  ;;  %v1481_v56 = vadd.f32 %v1695_v34, %v1480_v55 }
 0x2b5   : > { %v2047_v18 = vpop.f32.mrf.mxu1 }
 0x2b6   : > { %1532 = vst.msk [vmem:[%s2605_s22 + $0x20] sm:$0xff] %vm1527_vm3, %v1481_v56  ;;  %v1492_v58 = vadd.f32 %v2047_v18, %v1695_v34 }
 0x2b7   : > { %v1483_v59 = vpop.f32.mrf.mxu1 }
 0x2b8   : > { %1535 = vst.msk [vmem:[%s2605_s22 + $0x38] sm:$0xff] %vm1527_vm3, %v1492_v58  ;;  %v1484_v61 = vadd.f32 %v1695_v34, %v1483_v59 }
 0x2b9   : > { %v2050_v53 = vpop.f32.mrf.mxu1 }
 0x2ba   : > { %1533 = vst.msk [vmem:[%s2605_s22 + $0x28] sm:$0xff] %vm1527_vm3, %v1484_v61  ;;  %v1505_v1 = vadd.f32 %v2050_v53, %v1695_v34 }
 0x2bb   : > { %v1496_v4 = vpop.f32.mrf.mxu1 }
 0x2bc   : > { %1538 = vst.msk [vmem:[%s2605_s22 + $0x50] sm:$0xff] %vm1527_vm3, %v1505_v1  ;;  %v1497_v62 = vadd.f32 %v1695_v34, %v1496_v4 }
 0x2bd   : > { %v2051_v27 = vpop.f32.mrf.mxu1 }
 0x2be   : > { %1536 = vst.msk [vmem:[%s2605_s22 + $0x40] sm:$0xff] %vm1527_vm3, %v1497_v62  ;;  %v1508_v0 = vadd.f32 %v2051_v27, %v1695_v34 }
 0x2bf   : > { %v1499_v7 = vpop.f32.mrf.mxu1 }
 0x2c0   : > { %1539 = vst.msk [vmem:[%s2605_s22 + $0x58] sm:$0xff] %vm1527_vm3, %v1508_v0  ;;  %v1500_v11 = vadd.f32 %v1695_v34, %v1499_v7 }
 0x2c1   : > { %v2054_v25 = vpop.f32.mrf.mxu1 }
 0x2c2   : > { %1537 = vst.msk [vmem:[%s2605_s22 + $0x48] sm:$0xff] %vm1527_vm3, %v1500_v11  ;;  %v1521_v12 = vadd.f32 %v2054_v25, %v1695_v34 }
 0x2c3   : > { %v1512_v60 = vpop.f32.mrf.mxu1 }
 0x2c4   : > { %1542 = vst.msk [vmem:[%s2605_s22 + $0x70] sm:$0xff] %vm1527_vm3, %v1521_v12  ;;  %v1513_v2 = vadd.f32 %v1695_v34, %v1512_v60 }
 0x2c5   : > { %v2055_v14 = vpop.f32.mrf.mxu1 }
 0x2c6   : > { %1540 = vst.msk [vmem:[%s2605_s22 + $0x60] sm:$0xff] %vm1527_vm3, %v1513_v2  ;;  %v1524_v15 = vadd.f32 %v2055_v14, %v1695_v34 }
 0x2c7   : > { %v1515_v16 = vpop.f32.mrf.mxu1 }
 0x2c8   : > { %1543 = vst.msk [vmem:[%s2605_s22 + $0x78] sm:$0xff] %vm1527_vm3, %v1524_v15  ;;  %v1516_v17 = vadd.f32 %v1695_v34, %v1515_v16 }
 0x2ca   : > { %1541 = vst.msk [vmem:[%s2605_s22 + $0x68] sm:$0xff] %vm1527_vm3, %v1516_v17 }
 0x2cb PF: > { %s19_s30 = sadd.s32 1, %s2138_s30  }
 0x2cc   : > { %p16_p4 = scmp.ge.s32.totalorder %s19_s30, 6  }
 0x2ce   :  { %18 = sbr.rel (!%p16_p4) target bundleno = 1 (0x1), region = 86 }

</bundles_post_ra>
